<compile_context>
chip_gen: v7x
topology: tpu7x:2x2x1
jax: 0.10.0
libtpu: 0.0.40
codegen_flags: <defaults>
</compile_context>

<pallas_src>
import functools
import math

import numpy as np
import jax
import jax.numpy as jnp
from jax.experimental import pallas as pl
from jax.experimental.pallas import tpu as pltpu


# ---------------------------------------------------------------------------
# Pallas kernel: one full EncoderLayer on a (block_b, S, H) activation block
# ---------------------------------------------------------------------------
def make_encoder_layer_kernel(n_heads: int, head_dim: int,
                              compute_dtype=jnp.bfloat16, eps: float = 1e-5):
    """Kernel factory.  Matmul operands are cast to `compute_dtype` with f32
    accumulation; Q weights/bias arriving here are pre-scaled by
    1/sqrt(head_dim) in the wrapper."""

    def kernel(x_ref, mask_ref,
               wqkv_ref, bqkv_ref, wo_ref, bo_ref,
               g1_ref, be1_ref,
               w1_ref, b1_ref, w2_ref, b2_ref,
               g2_ref, be2_ref,
               out_ref):
        bb, seq, hid = x_ref.shape
        rows = bb * seq

        x3 = x_ref[...]                              # (bb, S, H) f32
        x2d = x3.reshape(rows, hid)

        # Additive attention-mask bias, computed once per grid step (f32).
        # (For a fully-masked row this degenerates like masked_fill does.)
        bias = jnp.where(mask_ref[...] == 0.0,
                         jnp.float32(-1e10), jnp.float32(0.0))   # (bb, 1, S)

        # ---- fused QKV projection: single MXU pass over (H, 3H) ----
        qkv = jnp.dot(x2d.astype(compute_dtype), wqkv_ref[...],
                      preferred_element_type=jnp.float32) + bqkv_ref[...]
        qkv = qkv.reshape(bb, seq, 3 * hid)

        wo = wo_ref[...]                             # (H, H) compute_dtype

        # ---- multi-head self-attention ----
        # Short static head loop; each iteration is batched over the batch
        # block via 3-D einsums.  The head-concat is folded into the output
        # projection, so no lane-dim concatenate is emitted.
        attn_out = jnp.zeros((rows, hid), jnp.float32)
        for h in range(n_heads):
            lo = h * head_dim
            qh = qkv[:, :, lo:lo + head_dim].astype(compute_dtype)
            kh = qkv[:, :, hid + lo:hid + lo + head_dim].astype(compute_dtype)
            vh = qkv[:, :, 2 * hid + lo:2 * hid + lo + head_dim].astype(compute_dtype)

            energy = jnp.einsum('bqd,bkd->bqk', qh, kh,
                                preferred_element_type=jnp.float32) + bias
            m = jnp.max(energy, axis=-1, keepdims=True)
            e = jnp.exp(energy - m)
            p = e * pl.reciprocal(jnp.sum(e, axis=-1, keepdims=True), approx=True)
            ctx = jnp.einsum('bqk,bkd->bqd', p.astype(compute_dtype), vh,
                             preferred_element_type=jnp.float32)      # (bb,S,hd)
            attn_out = attn_out + jnp.dot(
                ctx.reshape(rows, head_dim).astype(compute_dtype),
                wo[lo:lo + head_dim, :],
                preferred_element_type=jnp.float32)
        attn_out = attn_out + bo_ref[...]

        # ---- residual + LayerNorm 1 (dropout = identity in eval) ----
        y = x2d + attn_out
        mu = jnp.mean(y, axis=-1, keepdims=True)
        var = jnp.mean(jnp.square(y - mu), axis=-1, keepdims=True)
        y = (y - mu) * jax.lax.rsqrt(var + eps) * g1_ref[...] + be1_ref[...]

        # ---- position-wise feed-forward ----
        hdn = jnp.dot(y.astype(compute_dtype), w1_ref[...],
                      preferred_element_type=jnp.float32) + b1_ref[...]
        hdn = jnp.maximum(hdn, 0.0)
        f = jnp.dot(hdn.astype(compute_dtype), w2_ref[...],
                    preferred_element_type=jnp.float32) + b2_ref[...]

        # ---- residual + LayerNorm 2 ----
        z = y + f
        mu2 = jnp.mean(z, axis=-1, keepdims=True)
        var2 = jnp.mean(jnp.square(z - mu2), axis=-1, keepdims=True)
        out2d = (z - mu2) * jax.lax.rsqrt(var2 + eps) * g2_ref[...] + be2_ref[...]

        out_ref[...] = out2d.reshape(bb, seq, hid)

    return kernel


# ---------------------------------------------------------------------------
# Wrappers
# ---------------------------------------------------------------------------
def _pick_block_b(batch: int, seq: int, target_rows: int = 128) -> int:
    """Largest divisor of `batch` so one grid step has <= target_rows rows."""
    best = 1
    for cand in range(1, batch + 1):
        if batch % cand == 0 and cand * seq <= target_rows:
            best = cand
    return best


def _resident(shape):
    """BlockSpec for a parameter that stays fully resident in VMEM."""
    zeros = (0,) * len(shape)
    return pl.BlockSpec(shape, lambda b, _z=zeros: _z)


def fuse_layer_params(p, n_heads, compute_dtype=jnp.bfloat16):
    """Fold 1/sqrt(head_dim) into Q, fuse QKV, cast matmul weights to bf16."""
    H = p['wq'].shape[0]
    inv_scale = 1.0 / math.sqrt(H // n_heads)
    wqkv = jnp.concatenate([p['wq'] * inv_scale, p['wk'], p['wv']], axis=1)
    bqkv = jnp.concatenate([p['bq'] * inv_scale, p['bk'], p['bv']], axis=1)
    f32 = jnp.float32
    return {
        'wqkv': wqkv.astype(compute_dtype), 'bqkv': bqkv.astype(f32),
        'wo': p['wo'].astype(compute_dtype), 'bo': p['bo'].astype(f32),
        'g1': p['g1'].astype(f32), 'be1': p['be1'].astype(f32),
        'w1': p['w1'].astype(compute_dtype), 'b1': p['b1'].astype(f32),
        'w2': p['w2'].astype(compute_dtype), 'b2': p['b2'].astype(f32),
        'g2': p['g2'].astype(f32), 'be2': p['be2'].astype(f32),
    }


def encoder_layer_pallas(x, mask3, fused, n_heads,
                         compute_dtype=jnp.bfloat16, block_b=None):
    """x: (B, S, H) f32, mask3: (B, 1, S) f32."""
    B, S, H = x.shape
    P = fused['w1'].shape[1]
    head_dim = H // n_heads
    if block_b is None:
        block_b = _pick_block_b(B, S)

    kernel = make_encoder_layer_kernel(n_heads, head_dim, compute_dtype)

    grid_spec = pltpu.PrefetchScalarGridSpec(
        num_scalar_prefetch=0,
        grid=(B // block_b,),
        in_specs=[
            pl.BlockSpec((block_b, S, H), lambda b: (b, 0, 0)),   # x
            pl.BlockSpec((block_b, 1, S), lambda b: (b, 0, 0)),   # mask
            _resident((H, 3 * H)), _resident((1, 3 * H)),         # Wqkv, bqkv
            _resident((H, H)), _resident((1, H)),                 # Wo, bo
            _resident((1, H)), _resident((1, H)),                 # LN1 g, b
            _resident((H, P)), _resident((1, P)),                 # W1, b1
            _resident((P, H)), _resident((1, H)),                 # W2, b2
            _resident((1, H)), _resident((1, H)),                 # LN2 g, b
        ],
        out_specs=pl.BlockSpec((block_b, S, H), lambda b: (b, 0, 0)),
    )

    return pl.pallas_call(
        kernel,
        out_shape=jax.ShapeDtypeStruct((B, S, H), jnp.float32),
        grid_spec=grid_spec,
        compiler_params=pltpu.CompilerParams(
            # batch blocks are independent -> shard across TensorCores on v7x
            dimension_semantics=("parallel",)),
    )(x, mask3,
      fused['wqkv'], fused['bqkv'], fused['wo'], fused['bo'],
      fused['g1'], fused['be1'],
      fused['w1'], fused['b1'], fused['w2'], fused['b2'],
      fused['g2'], fused['be2'])


def encoder_pallas(tokens, src_mask, params, n_heads, compute_dtype=jnp.bfloat16):
    """Full Encoder forward.  tokens: (B,S) int32, src_mask: (B,1,1,S) float."""
    B, S = tokens.shape
    H = params['tok_emb'].shape[1]
    # TODO(synk): token/positional embedding gathers stay in plain JAX; a
    # dynamic row gather is not a good fit for a dense-tile Pallas kernel here.
    x = (params['tok_emb'][tokens] * jnp.float32(math.sqrt(H))
         + params['pos_emb'][:S][None, :, :]).astype(jnp.float32)
    mask3 = src_mask.reshape(B, 1, S).astype(jnp.float32)
    for p in params['layers']:
        fused = fuse_layer_params(p, n_heads, compute_dtype)
        x = encoder_layer_pallas(x, mask3, fused, n_heads, compute_dtype)
    return x


# ---------------------------------------------------------------------------
# Pure-JAX f32 reference (mirrors the PyTorch Encoder in eval mode)
# ---------------------------------------------------------------------------
def _layer_norm_ref(x, g, b, eps=1e-5):
    mu = jnp.mean(x, axis=-1, keepdims=True)
    var = jnp.mean((x - mu) ** 2, axis=-1, keepdims=True)
    return (x - mu) / jnp.sqrt(var + eps) * g + b


def encoder_ref(tokens, src_mask, params, n_heads):
    B, S = tokens.shape
    H = params['tok_emb'].shape[1]
    hd = H // n_heads
    x = params['tok_emb'][tokens] * np.sqrt(H) + params['pos_emb'][:S][None]
    m = src_mask.reshape(B, 1, 1, S)
    for p in params['layers']:
        q = (x @ p['wq'] + p['bq']).reshape(B, S, n_heads, hd).transpose(0, 2, 1, 3)
        k = (x @ p['wk'] + p['bk']).reshape(B, S, n_heads, hd).transpose(0, 2, 1, 3)
        v = (x @ p['wv'] + p['bv']).reshape(B, S, n_heads, hd).transpose(0, 2, 1, 3)
        energy = (q @ k.transpose(0, 1, 3, 2)) / np.sqrt(hd)
        energy = jnp.where(m == 0.0, -1e10, energy)
        attn = jax.nn.softmax(energy, axis=-1)
        ctx = (attn @ v).transpose(0, 2, 1, 3).reshape(B, S, H)
        y = _layer_norm_ref(x + ctx @ p['wo'] + p['bo'], p['g1'], p['be1'])
        f = jnp.maximum(y @ p['w1'] + p['b1'], 0.0) @ p['w2'] + p['b2']
        x = _layer_norm_ref(y + f, p['g2'], p['be2'])
    return x


if __name__ == "__main__":
    INPUT_DIM, MAX_LEN = 50, 1000
    B, S, H, NH, PF, NLAYERS = 2, 8, 32, 4, 64, 2

    keys = iter(list(jax.random.split(jax.random.PRNGKey(0), 40)))

    def init(shape, s=0.05):
        return jax.random.normal(next(keys), shape, dtype=jnp.float32) * s

    layers = []
    for _ in range(NLAYERS):
        layers.append({
            'wq': init((H, H)), 'bq': init((1, H)),
            'wk': init((H, H)), 'bk': init((1, H)),
            'wv': init((H, H)), 'bv': init((1, H)),
            'wo': init((H, H)), 'bo': init((1, H)),
            'g1': jnp.ones((1, H), jnp.float32), 'be1': jnp.zeros((1, H), jnp.float32),
            'w1': init((H, PF)), 'b1': init((1, PF)),
            'w2': init((PF, H)), 'b2': init((1, H)),
            'g2': jnp.ones((1, H), jnp.float32), 'be2': jnp.zeros((1, H), jnp.float32),
        })
    params = {
        'tok_emb': init((INPUT_DIM, H), 0.1),
        'pos_emb': init((MAX_LEN, H), 0.1),
        'layers': layers,
    }

    tokens = jax.random.randint(next(keys), (B, S), 0, INPUT_DIM, dtype=jnp.int32)
    # src_mask shaped like the PyTorch (B, 1, 1, S) mask; mask out the last
    # 3 key positions of batch element 1.
    mask = jnp.ones((B, 1, 1, S), jnp.float32).at[1, 0, 0, S - 3:].set(0.0)

    run_bf16 = jax.jit(functools.partial(
        encoder_pallas, n_heads=NH, compute_dtype=jnp.bfloat16))
    run_f32 = jax.jit(functools.partial(
        encoder_pallas, n_heads=NH, compute_dtype=jnp.float32))

    out_bf16 = jax.block_until_ready(run_bf16(tokens, mask, params))
    out_f32 = jax.block_until_ready(run_f32(tokens, mask, params))
    ref = encoder_ref(tokens, mask, params, NH)

    # Structural check with f32 matmul operands (only in-kernel deviations are
    # the approximate reciprocal / rsqrt on the EUP).
    np.testing.assert_allclose(np.asarray(out_f32), np.asarray(ref),
                               rtol=1e-2, atol=1e-2)
    # Production config: bf16 matmul operands with f32 accumulation vs f32 ref
    # (tolerance sized for bf16 mixed precision across 2 layers).
    np.testing.assert_allclose(np.asarray(out_bf16), np.asarray(ref),
                               rtol=5e-2, atol=5e-2)

    print("KERNEL_OK")
</pallas_src>

<mosaic_0001>
module attributes {stable_mosaic.version = 11 : i64} {
  func.func @kernel(%arg0: i32, %arg1: memref<2x8x32xf32, #tpu.memory_space<vmem>>, %arg2: memref<2x1x8xf32, #tpu.memory_space<vmem>>, %arg3: memref<32x96xbf16, #tpu.memory_space<vmem>>, %arg4: memref<1x96xf32, #tpu.memory_space<vmem>>, %arg5: memref<32x32xbf16, #tpu.memory_space<vmem>>, %arg6: memref<1x32xf32, #tpu.memory_space<vmem>>, %arg7: memref<1x32xf32, #tpu.memory_space<vmem>>, %arg8: memref<1x32xf32, #tpu.memory_space<vmem>>, %arg9: memref<32x64xbf16, #tpu.memory_space<vmem>>, %arg10: memref<1x64xf32, #tpu.memory_space<vmem>>, %arg11: memref<64x32xbf16, #tpu.memory_space<vmem>>, %arg12: memref<1x32xf32, #tpu.memory_space<vmem>>, %arg13: memref<1x32xf32, #tpu.memory_space<vmem>>, %arg14: memref<1x32xf32, #tpu.memory_space<vmem>>, %arg15: memref<2x8x32xf32, #tpu.memory_space<vmem>>) attributes {dimension_semantics = [#tpu.dimension_semantics<parallel>], iteration_bounds = array<i64: 1>, scalar_prefetch = 0 : i64, scratch_operands = 0 : i64, tpu.core_type = #tpu.core_type<tc>, window_params = [{transform_indices = @transform_0, window_bounds = array<i64: 2, 8, 32>}, {transform_indices = @transform_1, window_bounds = array<i64: 2, 1, 8>}, {pipeline_mode = #tpu.pipeline_mode<synchronous>, transform_indices = @transform_2, window_bounds = array<i64: 32, 96>}, {pipeline_mode = #tpu.pipeline_mode<synchronous>, transform_indices = @transform_3, window_bounds = array<i64: 1, 96>}, {pipeline_mode = #tpu.pipeline_mode<synchronous>, transform_indices = @transform_4, window_bounds = array<i64: 32, 32>}, {pipeline_mode = #tpu.pipeline_mode<synchronous>, transform_indices = @transform_5, window_bounds = array<i64: 1, 32>}, {pipeline_mode = #tpu.pipeline_mode<synchronous>, transform_indices = @transform_6, window_bounds = array<i64: 1, 32>}, {pipeline_mode = #tpu.pipeline_mode<synchronous>, transform_indices = @transform_7, window_bounds = array<i64: 1, 32>}, {pipeline_mode = #tpu.pipeline_mode<synchronous>, transform_indices = @transform_8, window_bounds = array<i64: 32, 64>}, {pipeline_mode = #tpu.pipeline_mode<synchronous>, transform_indices = @transform_9, window_bounds = array<i64: 1, 64>}, {pipeline_mode = #tpu.pipeline_mode<synchronous>, transform_indices = @transform_10, window_bounds = array<i64: 64, 32>}, {pipeline_mode = #tpu.pipeline_mode<synchronous>, transform_indices = @transform_11, window_bounds = array<i64: 1, 32>}, {pipeline_mode = #tpu.pipeline_mode<synchronous>, transform_indices = @transform_12, window_bounds = array<i64: 1, 32>}, {pipeline_mode = #tpu.pipeline_mode<synchronous>, transform_indices = @transform_13, window_bounds = array<i64: 1, 32>}, {transform_indices = @transform_14, window_bounds = array<i64: 2, 8, 32>}]} {
    %c0 = arith.constant 0 : index
    %c0_0 = arith.constant 0 : index
    %c0_1 = arith.constant 0 : index
    %0 = vector.load %arg1[%c0, %c0_0, %c0_1] : memref<2x8x32xf32, #tpu.memory_space<vmem>>, vector<2x8x32xf32>
    %1 = vector.shape_cast %0 : vector<2x8x32xf32> to vector<16x32xf32>
    %c0_2 = arith.constant 0 : index
    %c0_3 = arith.constant 0 : index
    %c0_4 = arith.constant 0 : index
    %2 = vector.load %arg2[%c0_2, %c0_3, %c0_4] : memref<2x1x8xf32, #tpu.memory_space<vmem>>, vector<2x1x8xf32>
    %cst = arith.constant 0.000000e+00 : f32
    %3 = vector.broadcast %cst : f32 to vector<2x1x8xf32>
    %4 = arith.cmpf oeq, %2, %3 : vector<2x1x8xf32>
    %cst_5 = arith.constant -1.000000e+10 : f32
    %cst_6 = arith.constant 0.000000e+00 : f32
    %5 = vector.broadcast %cst_5 : f32 to vector<2x1x8xf32>
    %6 = vector.broadcast %cst_6 : f32 to vector<2x1x8xf32>
    %7 = arith.select %4, %5, %6 : vector<2x1x8xi1>, vector<2x1x8xf32>
    %8 = arith.truncf %1 : vector<16x32xf32> to vector<16x32xbf16>
    %c0_7 = arith.constant 0 : index
    %c0_8 = arith.constant 0 : index
    %9 = vector.load %arg3[%c0_7, %c0_8] : memref<32x96xbf16, #tpu.memory_space<vmem>>, vector<32x96xbf16>
    %cst_9 = arith.constant dense<0.000000e+00> : vector<16x96xf32>
    %10 = tpu.matmul %8, %9, %cst_9 {dimension_numbers = #tpu.dot_dimension_numbers<[1], [0], [0], [1], [0, 0, 1, 1], [], []>} : vector<16x32xbf16>, vector<32x96xbf16>, vector<16x96xf32> -> vector<16x96xf32>
    %c0_10 = arith.constant 0 : index
    %c0_11 = arith.constant 0 : index
    %11 = vector.load %arg4[%c0_10, %c0_11] : memref<1x96xf32, #tpu.memory_space<vmem>>, vector<1x96xf32>
    %12 = vector.broadcast %11 : vector<1x96xf32> to vector<16x96xf32>
    %13 = arith.addf %10, %12 : vector<16x96xf32>
    %14 = vector.shape_cast %13 : vector<16x96xf32> to vector<2x8x96xf32>
    %c0_12 = arith.constant 0 : index
    %c0_13 = arith.constant 0 : index
    %15 = vector.load %arg5[%c0_12, %c0_13] : memref<32x32xbf16, #tpu.memory_space<vmem>>, vector<32x32xbf16>
    %cst_14 = arith.constant 0.000000e+00 : f32
    %16 = vector.broadcast %cst_14 : f32 to vector<16x32xf32>
    %17 = vector.extract_strided_slice %14 {offsets = [0, 0, 0], sizes = [2, 8, 8], strides = [1, 1, 1]} : vector<2x8x96xf32> to vector<2x8x8xf32>
    %18 = arith.truncf %17 : vector<2x8x8xf32> to vector<2x8x8xbf16>
    %19 = vector.extract_strided_slice %14 {offsets = [0, 0, 32], sizes = [2, 8, 8], strides = [1, 1, 1]} : vector<2x8x96xf32> to vector<2x8x8xf32>
    %20 = arith.truncf %19 : vector<2x8x8xf32> to vector<2x8x8xbf16>
    %21 = vector.extract_strided_slice %14 {offsets = [0, 0, 64], sizes = [2, 8, 8], strides = [1, 1, 1]} : vector<2x8x96xf32> to vector<2x8x8xf32>
    %22 = arith.truncf %21 : vector<2x8x8xf32> to vector<2x8x8xbf16>
    "tpu.trace_start"() <{level = 10 : i32, message = "bqd,bkd->bqk"}> : () -> ()
    %cst_15 = arith.constant dense<0.000000e+00> : vector<2x8x8xf32>
    %23 = tpu.matmul %18, %20, %cst_15 {dimension_numbers = #tpu.dot_dimension_numbers<[2], [2], [1], [1], [0, 0, 0, 1, 1, 1], [0], [0]>} : vector<2x8x8xbf16>, vector<2x8x8xbf16>, vector<2x8x8xf32> -> vector<2x8x8xf32>
    "tpu.trace_stop"() : () -> ()
    %24 = vector.broadcast %7 : vector<2x1x8xf32> to vector<2x8x8xf32>
    %25 = arith.addf %23, %24 : vector<2x8x8xf32>
    %cst_16 = arith.constant dense<0xFF800000> : vector<2x8xf32>
    %26 = vector.multi_reduction <maximumf>, %25, %cst_16 [2] : vector<2x8x8xf32> to vector<2x8xf32>
    %27 = vector.shape_cast %26 : vector<2x8xf32> to vector<2x8x1xf32>
    %28 = vector.broadcast %27 : vector<2x8x1xf32> to vector<2x8x8xf32>
    %29 = arith.subf %25, %28 : vector<2x8x8xf32>
    %30 = math.exp %29 : vector<2x8x8xf32>
    %cst_17 = arith.constant dense<0.000000e+00> : vector<2x8xf32>
    %31 = vector.multi_reduction <add>, %30, %cst_17 [2] : vector<2x8x8xf32> to vector<2x8xf32>
    %32 = vector.shape_cast %31 : vector<2x8xf32> to vector<2x8x1xf32>
    %33 = tpu.reciprocal %32 {approx = true} : vector<2x8x1xf32> -> vector<2x8x1xf32>
    %34 = vector.broadcast %33 : vector<2x8x1xf32> to vector<2x8x8xf32>
    %35 = arith.mulf %30, %34 : vector<2x8x8xf32>
    %36 = arith.truncf %35 : vector<2x8x8xf32> to vector<2x8x8xbf16>
    "tpu.trace_start"() <{level = 10 : i32, message = "bqk,bkd->bqd"}> : () -> ()
    %cst_18 = arith.constant dense<0.000000e+00> : vector<2x8x8xf32>
    %37 = tpu.matmul %36, %22, %cst_18 {dimension_numbers = #tpu.dot_dimension_numbers<[2], [1], [1], [2], [0, 0, 0, 1, 1, 2], [0], [0]>} : vector<2x8x8xbf16>, vector<2x8x8xbf16>, vector<2x8x8xf32> -> vector<2x8x8xf32>
    "tpu.trace_stop"() : () -> ()
    %38 = vector.shape_cast %37 : vector<2x8x8xf32> to vector<16x8xf32>
    %39 = arith.truncf %38 : vector<16x8xf32> to vector<16x8xbf16>
    %40 = vector.extract_strided_slice %15 {offsets = [0, 0], sizes = [8, 32], strides = [1, 1]} : vector<32x32xbf16> to vector<8x32xbf16>
    %cst_19 = arith.constant dense<0.000000e+00> : vector<16x32xf32>
    %41 = tpu.matmul %39, %40, %cst_19 {dimension_numbers = #tpu.dot_dimension_numbers<[1], [0], [0], [1], [0, 0, 1, 1], [], []>} : vector<16x8xbf16>, vector<8x32xbf16>, vector<16x32xf32> -> vector<16x32xf32>
    %42 = arith.addf %16, %41 : vector<16x32xf32>
    %43 = vector.extract_strided_slice %14 {offsets = [0, 0, 8], sizes = [2, 8, 8], strides = [1, 1, 1]} : vector<2x8x96xf32> to vector<2x8x8xf32>
    %44 = arith.truncf %43 : vector<2x8x8xf32> to vector<2x8x8xbf16>
    %45 = vector.extract_strided_slice %14 {offsets = [0, 0, 40], sizes = [2, 8, 8], strides = [1, 1, 1]} : vector<2x8x96xf32> to vector<2x8x8xf32>
    %46 = arith.truncf %45 : vector<2x8x8xf32> to vector<2x8x8xbf16>
    %47 = vector.extract_strided_slice %14 {offsets = [0, 0, 72], sizes = [2, 8, 8], strides = [1, 1, 1]} : vector<2x8x96xf32> to vector<2x8x8xf32>
    %48 = arith.truncf %47 : vector<2x8x8xf32> to vector<2x8x8xbf16>
    "tpu.trace_start"() <{level = 10 : i32, message = "bqd,bkd->bqk"}> : () -> ()
    %cst_20 = arith.constant dense<0.000000e+00> : vector<2x8x8xf32>
    %49 = tpu.matmul %44, %46, %cst_20 {dimension_numbers = #tpu.dot_dimension_numbers<[2], [2], [1], [1], [0, 0, 0, 1, 1, 1], [0], [0]>} : vector<2x8x8xbf16>, vector<2x8x8xbf16>, vector<2x8x8xf32> -> vector<2x8x8xf32>
    "tpu.trace_stop"() : () -> ()
    %50 = vector.broadcast %7 : vector<2x1x8xf32> to vector<2x8x8xf32>
    %51 = arith.addf %49, %50 : vector<2x8x8xf32>
    %cst_21 = arith.constant dense<0xFF800000> : vector<2x8xf32>
    %52 = vector.multi_reduction <maximumf>, %51, %cst_21 [2] : vector<2x8x8xf32> to vector<2x8xf32>
    %53 = vector.shape_cast %52 : vector<2x8xf32> to vector<2x8x1xf32>
    %54 = vector.broadcast %53 : vector<2x8x1xf32> to vector<2x8x8xf32>
    %55 = arith.subf %51, %54 : vector<2x8x8xf32>
    %56 = math.exp %55 : vector<2x8x8xf32>
    %cst_22 = arith.constant dense<0.000000e+00> : vector<2x8xf32>
    %57 = vector.multi_reduction <add>, %56, %cst_22 [2] : vector<2x8x8xf32> to vector<2x8xf32>
    %58 = vector.shape_cast %57 : vector<2x8xf32> to vector<2x8x1xf32>
    %59 = tpu.reciprocal %58 {approx = true} : vector<2x8x1xf32> -> vector<2x8x1xf32>
    %60 = vector.broadcast %59 : vector<2x8x1xf32> to vector<2x8x8xf32>
    %61 = arith.mulf %56, %60 : vector<2x8x8xf32>
    %62 = arith.truncf %61 : vector<2x8x8xf32> to vector<2x8x8xbf16>
    "tpu.trace_start"() <{level = 10 : i32, message = "bqk,bkd->bqd"}> : () -> ()
    %cst_23 = arith.constant dense<0.000000e+00> : vector<2x8x8xf32>
    %63 = tpu.matmul %62, %48, %cst_23 {dimension_numbers = #tpu.dot_dimension_numbers<[2], [1], [1], [2], [0, 0, 0, 1, 1, 2], [0], [0]>} : vector<2x8x8xbf16>, vector<2x8x8xbf16>, vector<2x8x8xf32> -> vector<2x8x8xf32>
    "tpu.trace_stop"() : () -> ()
    %64 = vector.shape_cast %63 : vector<2x8x8xf32> to vector<16x8xf32>
    %65 = arith.truncf %64 : vector<16x8xf32> to vector<16x8xbf16>
    %66 = vector.extract_strided_slice %15 {offsets = [8, 0], sizes = [8, 32], strides = [1, 1]} : vector<32x32xbf16> to vector<8x32xbf16>
    %cst_24 = arith.constant dense<0.000000e+00> : vector<16x32xf32>
    %67 = tpu.matmul %65, %66, %cst_24 {dimension_numbers = #tpu.dot_dimension_numbers<[1], [0], [0], [1], [0, 0, 1, 1], [], []>} : vector<16x8xbf16>, vector<8x32xbf16>, vector<16x32xf32> -> vector<16x32xf32>
    %68 = arith.addf %42, %67 : vector<16x32xf32>
    %69 = vector.extract_strided_slice %14 {offsets = [0, 0, 16], sizes = [2, 8, 8], strides = [1, 1, 1]} : vector<2x8x96xf32> to vector<2x8x8xf32>
    %70 = arith.truncf %69 : vector<2x8x8xf32> to vector<2x8x8xbf16>
    %71 = vector.extract_strided_slice %14 {offsets = [0, 0, 48], sizes = [2, 8, 8], strides = [1, 1, 1]} : vector<2x8x96xf32> to vector<2x8x8xf32>
    %72 = arith.truncf %71 : vector<2x8x8xf32> to vector<2x8x8xbf16>
    %73 = vector.extract_strided_slice %14 {offsets = [0, 0, 80], sizes = [2, 8, 8], strides = [1, 1, 1]} : vector<2x8x96xf32> to vector<2x8x8xf32>
    %74 = arith.truncf %73 : vector<2x8x8xf32> to vector<2x8x8xbf16>
    "tpu.trace_start"() <{level = 10 : i32, message = "bqd,bkd->bqk"}> : () -> ()
    %cst_25 = arith.constant dense<0.000000e+00> : vector<2x8x8xf32>
    %75 = tpu.matmul %70, %72, %cst_25 {dimension_numbers = #tpu.dot_dimension_numbers<[2], [2], [1], [1], [0, 0, 0, 1, 1, 1], [0], [0]>} : vector<2x8x8xbf16>, vector<2x8x8xbf16>, vector<2x8x8xf32> -> vector<2x8x8xf32>
    "tpu.trace_stop"() : () -> ()
    %76 = vector.broadcast %7 : vector<2x1x8xf32> to vector<2x8x8xf32>
    %77 = arith.addf %75, %76 : vector<2x8x8xf32>
    %cst_26 = arith.constant dense<0xFF800000> : vector<2x8xf32>
    %78 = vector.multi_reduction <maximumf>, %77, %cst_26 [2] : vector<2x8x8xf32> to vector<2x8xf32>
    %79 = vector.shape_cast %78 : vector<2x8xf32> to vector<2x8x1xf32>
    %80 = vector.broadcast %79 : vector<2x8x1xf32> to vector<2x8x8xf32>
    %81 = arith.subf %77, %80 : vector<2x8x8xf32>
    %82 = math.exp %81 : vector<2x8x8xf32>
    %cst_27 = arith.constant dense<0.000000e+00> : vector<2x8xf32>
    %83 = vector.multi_reduction <add>, %82, %cst_27 [2] : vector<2x8x8xf32> to vector<2x8xf32>
    %84 = vector.shape_cast %83 : vector<2x8xf32> to vector<2x8x1xf32>
    %85 = tpu.reciprocal %84 {approx = true} : vector<2x8x1xf32> -> vector<2x8x1xf32>
    %86 = vector.broadcast %85 : vector<2x8x1xf32> to vector<2x8x8xf32>
    %87 = arith.mulf %82, %86 : vector<2x8x8xf32>
    %88 = arith.truncf %87 : vector<2x8x8xf32> to vector<2x8x8xbf16>
    "tpu.trace_start"() <{level = 10 : i32, message = "bqk,bkd->bqd"}> : () -> ()
    %cst_28 = arith.constant dense<0.000000e+00> : vector<2x8x8xf32>
    %89 = tpu.matmul %88, %74, %cst_28 {dimension_numbers = #tpu.dot_dimension_numbers<[2], [1], [1], [2], [0, 0, 0, 1, 1, 2], [0], [0]>} : vector<2x8x8xbf16>, vector<2x8x8xbf16>, vector<2x8x8xf32> -> vector<2x8x8xf32>
    "tpu.trace_stop"() : () -> ()
    %90 = vector.shape_cast %89 : vector<2x8x8xf32> to vector<16x8xf32>
    %91 = arith.truncf %90 : vector<16x8xf32> to vector<16x8xbf16>
    %92 = vector.extract_strided_slice %15 {offsets = [16, 0], sizes = [8, 32], strides = [1, 1]} : vector<32x32xbf16> to vector<8x32xbf16>
    %cst_29 = arith.constant dense<0.000000e+00> : vector<16x32xf32>
    %93 = tpu.matmul %91, %92, %cst_29 {dimension_numbers = #tpu.dot_dimension_numbers<[1], [0], [0], [1], [0, 0, 1, 1], [], []>} : vector<16x8xbf16>, vector<8x32xbf16>, vector<16x32xf32> -> vector<16x32xf32>
    %94 = arith.addf %68, %93 : vector<16x32xf32>
    %95 = vector.extract_strided_slice %14 {offsets = [0, 0, 24], sizes = [2, 8, 8], strides = [1, 1, 1]} : vector<2x8x96xf32> to vector<2x8x8xf32>
    %96 = arith.truncf %95 : vector<2x8x8xf32> to vector<2x8x8xbf16>
    %97 = vector.extract_strided_slice %14 {offsets = [0, 0, 56], sizes = [2, 8, 8], strides = [1, 1, 1]} : vector<2x8x96xf32> to vector<2x8x8xf32>
    %98 = arith.truncf %97 : vector<2x8x8xf32> to vector<2x8x8xbf16>
    %99 = vector.extract_strided_slice %14 {offsets = [0, 0, 88], sizes = [2, 8, 8], strides = [1, 1, 1]} : vector<2x8x96xf32> to vector<2x8x8xf32>
    %100 = arith.truncf %99 : vector<2x8x8xf32> to vector<2x8x8xbf16>
    "tpu.trace_start"() <{level = 10 : i32, message = "bqd,bkd->bqk"}> : () -> ()
    %cst_30 = arith.constant dense<0.000000e+00> : vector<2x8x8xf32>
    %101 = tpu.matmul %96, %98, %cst_30 {dimension_numbers = #tpu.dot_dimension_numbers<[2], [2], [1], [1], [0, 0, 0, 1, 1, 1], [0], [0]>} : vector<2x8x8xbf16>, vector<2x8x8xbf16>, vector<2x8x8xf32> -> vector<2x8x8xf32>
    "tpu.trace_stop"() : () -> ()
    %102 = vector.broadcast %7 : vector<2x1x8xf32> to vector<2x8x8xf32>
    %103 = arith.addf %101, %102 : vector<2x8x8xf32>
    %cst_31 = arith.constant dense<0xFF800000> : vector<2x8xf32>
    %104 = vector.multi_reduction <maximumf>, %103, %cst_31 [2] : vector<2x8x8xf32> to vector<2x8xf32>
    %105 = vector.shape_cast %104 : vector<2x8xf32> to vector<2x8x1xf32>
    %106 = vector.broadcast %105 : vector<2x8x1xf32> to vector<2x8x8xf32>
    %107 = arith.subf %103, %106 : vector<2x8x8xf32>
    %108 = math.exp %107 : vector<2x8x8xf32>
    %cst_32 = arith.constant dense<0.000000e+00> : vector<2x8xf32>
    %109 = vector.multi_reduction <add>, %108, %cst_32 [2] : vector<2x8x8xf32> to vector<2x8xf32>
    %110 = vector.shape_cast %109 : vector<2x8xf32> to vector<2x8x1xf32>
    %111 = tpu.reciprocal %110 {approx = true} : vector<2x8x1xf32> -> vector<2x8x1xf32>
    %112 = vector.broadcast %111 : vector<2x8x1xf32> to vector<2x8x8xf32>
    %113 = arith.mulf %108, %112 : vector<2x8x8xf32>
    %114 = arith.truncf %113 : vector<2x8x8xf32> to vector<2x8x8xbf16>
    "tpu.trace_start"() <{level = 10 : i32, message = "bqk,bkd->bqd"}> : () -> ()
    %cst_33 = arith.constant dense<0.000000e+00> : vector<2x8x8xf32>
    %115 = tpu.matmul %114, %100, %cst_33 {dimension_numbers = #tpu.dot_dimension_numbers<[2], [1], [1], [2], [0, 0, 0, 1, 1, 2], [0], [0]>} : vector<2x8x8xbf16>, vector<2x8x8xbf16>, vector<2x8x8xf32> -> vector<2x8x8xf32>
    "tpu.trace_stop"() : () -> ()
    %116 = vector.shape_cast %115 : vector<2x8x8xf32> to vector<16x8xf32>
    %117 = arith.truncf %116 : vector<16x8xf32> to vector<16x8xbf16>
    %118 = vector.extract_strided_slice %15 {offsets = [24, 0], sizes = [8, 32], strides = [1, 1]} : vector<32x32xbf16> to vector<8x32xbf16>
    %cst_34 = arith.constant dense<0.000000e+00> : vector<16x32xf32>
    %119 = tpu.matmul %117, %118, %cst_34 {dimension_numbers = #tpu.dot_dimension_numbers<[1], [0], [0], [1], [0, 0, 1, 1], [], []>} : vector<16x8xbf16>, vector<8x32xbf16>, vector<16x32xf32> -> vector<16x32xf32>
    %120 = arith.addf %94, %119 : vector<16x32xf32>
    %c0_35 = arith.constant 0 : index
    %c0_36 = arith.constant 0 : index
    %121 = vector.load %arg6[%c0_35, %c0_36] : memref<1x32xf32, #tpu.memory_space<vmem>>, vector<1x32xf32>
    %122 = vector.broadcast %121 : vector<1x32xf32> to vector<16x32xf32>
    %123 = arith.addf %120, %122 : vector<16x32xf32>
    %124 = arith.addf %1, %123 : vector<16x32xf32>
    %cst_37 = arith.constant dense<0.000000e+00> : vector<16xf32>
    %125 = vector.multi_reduction <add>, %124, %cst_37 [1] : vector<16x32xf32> to vector<16xf32>
    %126 = vector.shape_cast %125 : vector<16xf32> to vector<16x1xf32>
    %cst_38 = arith.constant 3.200000e+01 : f32
    %127 = vector.broadcast %cst_38 : f32 to vector<16x1xf32>
    %128 = arith.divf %126, %127 : vector<16x1xf32>
    %129 = vector.broadcast %128 : vector<16x1xf32> to vector<16x32xf32>
    %130 = arith.subf %124, %129 : vector<16x32xf32>
    %131 = arith.mulf %130, %130 : vector<16x32xf32>
    %cst_39 = arith.constant dense<0.000000e+00> : vector<16xf32>
    %132 = vector.multi_reduction <add>, %131, %cst_39 [1] : vector<16x32xf32> to vector<16xf32>
    %133 = vector.shape_cast %132 : vector<16xf32> to vector<16x1xf32>
    %cst_40 = arith.constant 3.200000e+01 : f32
    %134 = vector.broadcast %cst_40 : f32 to vector<16x1xf32>
    %135 = arith.divf %133, %134 : vector<16x1xf32>
    %136 = vector.broadcast %128 : vector<16x1xf32> to vector<16x32xf32>
    %137 = arith.subf %124, %136 : vector<16x32xf32>
    %cst_41 = arith.constant 9.99999974E-6 : f32
    %138 = vector.broadcast %cst_41 : f32 to vector<16x1xf32>
    %139 = arith.addf %135, %138 : vector<16x1xf32>
    %140 = math.rsqrt %139 : vector<16x1xf32>
    %141 = vector.broadcast %140 : vector<16x1xf32> to vector<16x32xf32>
    %142 = arith.mulf %137, %141 : vector<16x32xf32>
    %c0_42 = arith.constant 0 : index
    %c0_43 = arith.constant 0 : index
    %143 = vector.load %arg7[%c0_42, %c0_43] : memref<1x32xf32, #tpu.memory_space<vmem>>, vector<1x32xf32>
    %144 = vector.broadcast %143 : vector<1x32xf32> to vector<16x32xf32>
    %145 = arith.mulf %142, %144 : vector<16x32xf32>
    %c0_44 = arith.constant 0 : index
    %c0_45 = arith.constant 0 : index
    %146 = vector.load %arg8[%c0_44, %c0_45] : memref<1x32xf32, #tpu.memory_space<vmem>>, vector<1x32xf32>
    %147 = vector.broadcast %146 : vector<1x32xf32> to vector<16x32xf32>
    %148 = arith.addf %145, %147 : vector<16x32xf32>
    %149 = arith.truncf %148 : vector<16x32xf32> to vector<16x32xbf16>
    %c0_46 = arith.constant 0 : index
    %c0_47 = arith.constant 0 : index
    %150 = vector.load %arg9[%c0_46, %c0_47] : memref<32x64xbf16, #tpu.memory_space<vmem>>, vector<32x64xbf16>
    %cst_48 = arith.constant dense<0.000000e+00> : vector<16x64xf32>
    %151 = tpu.matmul %149, %150, %cst_48 {dimension_numbers = #tpu.dot_dimension_numbers<[1], [0], [0], [1], [0, 0, 1, 1], [], []>} : vector<16x32xbf16>, vector<32x64xbf16>, vector<16x64xf32> -> vector<16x64xf32>
    %c0_49 = arith.constant 0 : index
    %c0_50 = arith.constant 0 : index
    %152 = vector.load %arg10[%c0_49, %c0_50] : memref<1x64xf32, #tpu.memory_space<vmem>>, vector<1x64xf32>
    %153 = vector.broadcast %152 : vector<1x64xf32> to vector<16x64xf32>
    %154 = arith.addf %151, %153 : vector<16x64xf32>
    %cst_51 = arith.constant 0.000000e+00 : f32
    %155 = vector.broadcast %cst_51 : f32 to vector<16x64xf32>
    %156 = arith.maximumf %154, %155 : vector<16x64xf32>
    %157 = arith.truncf %156 : vector<16x64xf32> to vector<16x64xbf16>
    %c0_52 = arith.constant 0 : index
    %c0_53 = arith.constant 0 : index
    %158 = vector.load %arg11[%c0_52, %c0_53] : memref<64x32xbf16, #tpu.memory_space<vmem>>, vector<64x32xbf16>
    %cst_54 = arith.constant dense<0.000000e+00> : vector<16x32xf32>
    %159 = tpu.matmul %157, %158, %cst_54 {dimension_numbers = #tpu.dot_dimension_numbers<[1], [0], [0], [1], [0, 0, 1, 1], [], []>} : vector<16x64xbf16>, vector<64x32xbf16>, vector<16x32xf32> -> vector<16x32xf32>
    %c0_55 = arith.constant 0 : index
    %c0_56 = arith.constant 0 : index
    %160 = vector.load %arg12[%c0_55, %c0_56] : memref<1x32xf32, #tpu.memory_space<vmem>>, vector<1x32xf32>
    %161 = vector.broadcast %160 : vector<1x32xf32> to vector<16x32xf32>
    %162 = arith.addf %159, %161 : vector<16x32xf32>
    %163 = arith.addf %148, %162 : vector<16x32xf32>
    %cst_57 = arith.constant dense<0.000000e+00> : vector<16xf32>
    %164 = vector.multi_reduction <add>, %163, %cst_57 [1] : vector<16x32xf32> to vector<16xf32>
    %165 = vector.shape_cast %164 : vector<16xf32> to vector<16x1xf32>
    %cst_58 = arith.constant 3.200000e+01 : f32
    %166 = vector.broadcast %cst_58 : f32 to vector<16x1xf32>
    %167 = arith.divf %165, %166 : vector<16x1xf32>
    %168 = vector.broadcast %167 : vector<16x1xf32> to vector<16x32xf32>
    %169 = arith.subf %163, %168 : vector<16x32xf32>
    %170 = arith.mulf %169, %169 : vector<16x32xf32>
    %cst_59 = arith.constant dense<0.000000e+00> : vector<16xf32>
    %171 = vector.multi_reduction <add>, %170, %cst_59 [1] : vector<16x32xf32> to vector<16xf32>
    %172 = vector.shape_cast %171 : vector<16xf32> to vector<16x1xf32>
    %cst_60 = arith.constant 3.200000e+01 : f32
    %173 = vector.broadcast %cst_60 : f32 to vector<16x1xf32>
    %174 = arith.divf %172, %173 : vector<16x1xf32>
    %175 = vector.broadcast %167 : vector<16x1xf32> to vector<16x32xf32>
    %176 = arith.subf %163, %175 : vector<16x32xf32>
    %cst_61 = arith.constant 9.99999974E-6 : f32
    %177 = vector.broadcast %cst_61 : f32 to vector<16x1xf32>
    %178 = arith.addf %174, %177 : vector<16x1xf32>
    %179 = math.rsqrt %178 : vector<16x1xf32>
    %180 = vector.broadcast %179 : vector<16x1xf32> to vector<16x32xf32>
    %181 = arith.mulf %176, %180 : vector<16x32xf32>
    %c0_62 = arith.constant 0 : index
    %c0_63 = arith.constant 0 : index
    %182 = vector.load %arg13[%c0_62, %c0_63] : memref<1x32xf32, #tpu.memory_space<vmem>>, vector<1x32xf32>
    %183 = vector.broadcast %182 : vector<1x32xf32> to vector<16x32xf32>
    %184 = arith.mulf %181, %183 : vector<16x32xf32>
    %c0_64 = arith.constant 0 : index
    %c0_65 = arith.constant 0 : index
    %185 = vector.load %arg14[%c0_64, %c0_65] : memref<1x32xf32, #tpu.memory_space<vmem>>, vector<1x32xf32>
    %186 = vector.broadcast %185 : vector<1x32xf32> to vector<16x32xf32>
    %187 = arith.addf %184, %186 : vector<16x32xf32>
    %188 = vector.shape_cast %187 : vector<16x32xf32> to vector<2x8x32xf32>
    %c0_66 = arith.constant 0 : index
    %c0_67 = arith.constant 0 : index
    %c0_68 = arith.constant 0 : index
    %189 = vector.load %arg15[%c0_66, %c0_67, %c0_68] : memref<2x8x32xf32, #tpu.memory_space<vmem>>, vector<2x8x32xf32>
    tpu.vector_store %arg15[%c0_66, %c0_67, %c0_68], %188 {strides = array<i32>} : memref<2x8x32xf32, #tpu.memory_space<vmem>>, vector<2x8x32xf32>,
    return
  }
  func.func @transform_0(%arg0: i32) -> (i32, i32, i32) {
    %c0_i32 = arith.constant 0 : i32
    %c0_i32_0 = arith.constant 0 : i32
    %c0_i32_1 = arith.constant 0 : i32
    return %arg0, %c0_i32, %c0_i32_0 : i32, i32, i32
  }
  func.func @transform_1(%arg0: i32) -> (i32, i32, i32) {
    %c0_i32 = arith.constant 0 : i32
    %c0_i32_0 = arith.constant 0 : i32
    %c0_i32_1 = arith.constant 0 : i32
    return %arg0, %c0_i32, %c0_i32_0 : i32, i32, i32
  }
  func.func @transform_2(%arg0: i32) -> (i32, i32) {
    %c0_i32 = arith.constant 0 : i32
    %c0_i32_0 = arith.constant 0 : i32
    %c0_i32_1 = arith.constant 0 : i32
    return %c0_i32, %c0_i32_0 : i32, i32
  }
  func.func @transform_3(%arg0: i32) -> (i32, i32) {
    %c0_i32 = arith.constant 0 : i32
    %c0_i32_0 = arith.constant 0 : i32
    %c0_i32_1 = arith.constant 0 : i32
    return %c0_i32, %c0_i32_0 : i32, i32
  }
  func.func @transform_4(%arg0: i32) -> (i32, i32) {
    %c0_i32 = arith.constant 0 : i32
    %c0_i32_0 = arith.constant 0 : i32
    %c0_i32_1 = arith.constant 0 : i32
    return %c0_i32, %c0_i32_0 : i32, i32
  }
  func.func @transform_5(%arg0: i32) -> (i32, i32) {
    %c0_i32 = arith.constant 0 : i32
    %c0_i32_0 = arith.constant 0 : i32
    %c0_i32_1 = arith.constant 0 : i32
    return %c0_i32, %c0_i32_0 : i32, i32
  }
  func.func @transform_6(%arg0: i32) -> (i32, i32) {
    %c0_i32 = arith.constant 0 : i32
    %c0_i32_0 = arith.constant 0 : i32
    %c0_i32_1 = arith.constant 0 : i32
    return %c0_i32, %c0_i32_0 : i32, i32
  }
  func.func @transform_7(%arg0: i32) -> (i32, i32) {
    %c0_i32 = arith.constant 0 : i32
    %c0_i32_0 = arith.constant 0 : i32
    %c0_i32_1 = arith.constant 0 : i32
    return %c0_i32, %c0_i32_0 : i32, i32
  }
  func.func @transform_8(%arg0: i32) -> (i32, i32) {
    %c0_i32 = arith.constant 0 : i32
    %c0_i32_0 = arith.constant 0 : i32
    %c0_i32_1 = arith.constant 0 : i32
    return %c0_i32, %c0_i32_0 : i32, i32
  }
  func.func @transform_9(%arg0: i32) -> (i32, i32) {
    %c0_i32 = arith.constant 0 : i32
    %c0_i32_0 = arith.constant 0 : i32
    %c0_i32_1 = arith.constant 0 : i32
    return %c0_i32, %c0_i32_0 : i32, i32
  }
  func.func @transform_10(%arg0: i32) -> (i32, i32) {
    %c0_i32 = arith.constant 0 : i32
    %c0_i32_0 = arith.constant 0 : i32
    %c0_i32_1 = arith.constant 0 : i32
    return %c0_i32, %c0_i32_0 : i32, i32
  }
  func.func @transform_11(%arg0: i32) -> (i32, i32) {
    %c0_i32 = arith.constant 0 : i32
    %c0_i32_0 = arith.constant 0 : i32
    %c0_i32_1 = arith.constant 0 : i32
    return %c0_i32, %c0_i32_0 : i32, i32
  }
  func.func @transform_12(%arg0: i32) -> (i32, i32) {
    %c0_i32 = arith.constant 0 : i32
    %c0_i32_0 = arith.constant 0 : i32
    %c0_i32_1 = arith.constant 0 : i32
    return %c0_i32, %c0_i32_0 : i32, i32
  }
  func.func @transform_13(%arg0: i32) -> (i32, i32) {
    %c0_i32 = arith.constant 0 : i32
    %c0_i32_0 = arith.constant 0 : i32
    %c0_i32_1 = arith.constant 0 : i32
    return %c0_i32, %c0_i32_0 : i32, i32
  }
  func.func @transform_14(%arg0: i32) -> (i32, i32, i32) {
    %c0_i32 = arith.constant 0 : i32
    %c0_i32_0 = arith.constant 0 : i32
    %c0_i32_1 = arith.constant 0 : i32
    return %arg0, %c0_i32, %c0_i32_0 : i32, i32, i32
  }
}

module attributes {stable_mosaic.version = 11 : i64} {
  func.func @kernel(%arg0: i32, %arg1: memref<2x8x32xf32, #tpu.memory_space<vmem>>, %arg2: memref<2x1x8xf32, #tpu.memory_space<vmem>>, %arg3: memref<32x96xbf16, #tpu.memory_space<vmem>>, %arg4: memref<1x96xf32, #tpu.memory_space<vmem>>, %arg5: memref<32x32xbf16, #tpu.memory_space<vmem>>, %arg6: memref<1x32xf32, #tpu.memory_space<vmem>>, %arg7: memref<1x32xf32, #tpu.memory_space<vmem>>, %arg8: memref<1x32xf32, #tpu.memory_space<vmem>>, %arg9: memref<32x64xbf16, #tpu.memory_space<vmem>>, %arg10: memref<1x64xf32, #tpu.memory_space<vmem>>, %arg11: memref<64x32xbf16, #tpu.memory_space<vmem>>, %arg12: memref<1x32xf32, #tpu.memory_space<vmem>>, %arg13: memref<1x32xf32, #tpu.memory_space<vmem>>, %arg14: memref<1x32xf32, #tpu.memory_space<vmem>>, %arg15: memref<2x8x32xf32, #tpu.memory_space<vmem>>) attributes {dimension_semantics = [#tpu.dimension_semantics<parallel>], iteration_bounds = array<i64: 1>, scalar_prefetch = 0 : i64, scratch_operands = 0 : i64, tpu.core_type = #tpu.core_type<tc>, window_params = [{transform_indices = @transform_0, window_bounds = array<i64: 2, 8, 32>}, {transform_indices = @transform_1, window_bounds = array<i64: 2, 1, 8>}, {pipeline_mode = #tpu.pipeline_mode<synchronous>, transform_indices = @transform_2, window_bounds = array<i64: 32, 96>}, {pipeline_mode = #tpu.pipeline_mode<synchronous>, transform_indices = @transform_3, window_bounds = array<i64: 1, 96>}, {pipeline_mode = #tpu.pipeline_mode<synchronous>, transform_indices = @transform_4, window_bounds = array<i64: 32, 32>}, {pipeline_mode = #tpu.pipeline_mode<synchronous>, transform_indices = @transform_5, window_bounds = array<i64: 1, 32>}, {pipeline_mode = #tpu.pipeline_mode<synchronous>, transform_indices = @transform_6, window_bounds = array<i64: 1, 32>}, {pipeline_mode = #tpu.pipeline_mode<synchronous>, transform_indices = @transform_7, window_bounds = array<i64: 1, 32>}, {pipeline_mode = #tpu.pipeline_mode<synchronous>, transform_indices = @transform_8, window_bounds = array<i64: 32, 64>}, {pipeline_mode = #tpu.pipeline_mode<synchronous>, transform_indices = @transform_9, window_bounds = array<i64: 1, 64>}, {pipeline_mode = #tpu.pipeline_mode<synchronous>, transform_indices = @transform_10, window_bounds = array<i64: 64, 32>}, {pipeline_mode = #tpu.pipeline_mode<synchronous>, transform_indices = @transform_11, window_bounds = array<i64: 1, 32>}, {pipeline_mode = #tpu.pipeline_mode<synchronous>, transform_indices = @transform_12, window_bounds = array<i64: 1, 32>}, {pipeline_mode = #tpu.pipeline_mode<synchronous>, transform_indices = @transform_13, window_bounds = array<i64: 1, 32>}, {transform_indices = @transform_14, window_bounds = array<i64: 2, 8, 32>}]} {
    %c0 = arith.constant 0 : index
    %c0_0 = arith.constant 0 : index
    %c0_1 = arith.constant 0 : index
    %0 = vector.load %arg1[%c0, %c0_0, %c0_1] : memref<2x8x32xf32, #tpu.memory_space<vmem>>, vector<2x8x32xf32>
    %1 = vector.shape_cast %0 : vector<2x8x32xf32> to vector<16x32xf32>
    %c0_2 = arith.constant 0 : index
    %c0_3 = arith.constant 0 : index
    %c0_4 = arith.constant 0 : index
    %2 = vector.load %arg2[%c0_2, %c0_3, %c0_4] : memref<2x1x8xf32, #tpu.memory_space<vmem>>, vector<2x1x8xf32>
    %cst = arith.constant 0.000000e+00 : f32
    %3 = vector.broadcast %cst : f32 to vector<2x1x8xf32>
    %4 = arith.cmpf oeq, %2, %3 : vector<2x1x8xf32>
    %cst_5 = arith.constant -1.000000e+10 : f32
    %cst_6 = arith.constant 0.000000e+00 : f32
    %5 = vector.broadcast %cst_5 : f32 to vector<2x1x8xf32>
    %6 = vector.broadcast %cst_6 : f32 to vector<2x1x8xf32>
    %7 = arith.select %4, %5, %6 : vector<2x1x8xi1>, vector<2x1x8xf32>
    %8 = arith.truncf %1 : vector<16x32xf32> to vector<16x32xbf16>
    %c0_7 = arith.constant 0 : index
    %c0_8 = arith.constant 0 : index
    %9 = vector.load %arg3[%c0_7, %c0_8] : memref<32x96xbf16, #tpu.memory_space<vmem>>, vector<32x96xbf16>
    %cst_9 = arith.constant dense<0.000000e+00> : vector<16x96xf32>
    %10 = tpu.matmul %8, %9, %cst_9 {dimension_numbers = #tpu.dot_dimension_numbers<[1], [0], [0], [1], [0, 0, 1, 1], [], []>} : vector<16x32xbf16>, vector<32x96xbf16>, vector<16x96xf32> -> vector<16x96xf32>
    %c0_10 = arith.constant 0 : index
    %c0_11 = arith.constant 0 : index
    %11 = vector.load %arg4[%c0_10, %c0_11] : memref<1x96xf32, #tpu.memory_space<vmem>>, vector<1x96xf32>
    %12 = vector.broadcast %11 : vector<1x96xf32> to vector<16x96xf32>
    %13 = arith.addf %10, %12 : vector<16x96xf32>
    %14 = vector.shape_cast %13 : vector<16x96xf32> to vector<2x8x96xf32>
    %c0_12 = arith.constant 0 : index
    %c0_13 = arith.constant 0 : index
    %15 = vector.load %arg5[%c0_12, %c0_13] : memref<32x32xbf16, #tpu.memory_space<vmem>>, vector<32x32xbf16>
    %cst_14 = arith.constant 0.000000e+00 : f32
    %16 = vector.broadcast %cst_14 : f32 to vector<16x32xf32>
    %17 = vector.extract_strided_slice %14 {offsets = [0, 0, 0], sizes = [2, 8, 8], strides = [1, 1, 1]} : vector<2x8x96xf32> to vector<2x8x8xf32>
    %18 = arith.truncf %17 : vector<2x8x8xf32> to vector<2x8x8xbf16>
    %19 = vector.extract_strided_slice %14 {offsets = [0, 0, 32], sizes = [2, 8, 8], strides = [1, 1, 1]} : vector<2x8x96xf32> to vector<2x8x8xf32>
    %20 = arith.truncf %19 : vector<2x8x8xf32> to vector<2x8x8xbf16>
    %21 = vector.extract_strided_slice %14 {offsets = [0, 0, 64], sizes = [2, 8, 8], strides = [1, 1, 1]} : vector<2x8x96xf32> to vector<2x8x8xf32>
    %22 = arith.truncf %21 : vector<2x8x8xf32> to vector<2x8x8xbf16>
    "tpu.trace_start"() <{level = 10 : i32, message = "bqd,bkd->bqk"}> : () -> ()
    %cst_15 = arith.constant dense<0.000000e+00> : vector<2x8x8xf32>
    %23 = tpu.matmul %18, %20, %cst_15 {dimension_numbers = #tpu.dot_dimension_numbers<[2], [2], [1], [1], [0, 0, 0, 1, 1, 1], [0], [0]>} : vector<2x8x8xbf16>, vector<2x8x8xbf16>, vector<2x8x8xf32> -> vector<2x8x8xf32>
    "tpu.trace_stop"() : () -> ()
    %24 = vector.broadcast %7 : vector<2x1x8xf32> to vector<2x8x8xf32>
    %25 = arith.addf %23, %24 : vector<2x8x8xf32>
    %cst_16 = arith.constant dense<0xFF800000> : vector<2x8xf32>
    %26 = vector.multi_reduction <maximumf>, %25, %cst_16 [2] : vector<2x8x8xf32> to vector<2x8xf32>
    %27 = vector.shape_cast %26 : vector<2x8xf32> to vector<2x8x1xf32>
    %28 = vector.broadcast %27 : vector<2x8x1xf32> to vector<2x8x8xf32>
    %29 = arith.subf %25, %28 : vector<2x8x8xf32>
    %30 = math.exp %29 : vector<2x8x8xf32>
    %cst_17 = arith.constant dense<0.000000e+00> : vector<2x8xf32>
    %31 = vector.multi_reduction <add>, %30, %cst_17 [2] : vector<2x8x8xf32> to vector<2x8xf32>
    %32 = vector.shape_cast %31 : vector<2x8xf32> to vector<2x8x1xf32>
    %33 = tpu.reciprocal %32 {approx = true} : vector<2x8x1xf32> -> vector<2x8x1xf32>
    %34 = vector.broadcast %33 : vector<2x8x1xf32> to vector<2x8x8xf32>
    %35 = arith.mulf %30, %34 : vector<2x8x8xf32>
    %36 = arith.truncf %35 : vector<2x8x8xf32> to vector<2x8x8xbf16>
    "tpu.trace_start"() <{level = 10 : i32, message = "bqk,bkd->bqd"}> : () -> ()
    %cst_18 = arith.constant dense<0.000000e+00> : vector<2x8x8xf32>
    %37 = tpu.matmul %36, %22, %cst_18 {dimension_numbers = #tpu.dot_dimension_numbers<[2], [1], [1], [2], [0, 0, 0, 1, 1, 2], [0], [0]>} : vector<2x8x8xbf16>, vector<2x8x8xbf16>, vector<2x8x8xf32> -> vector<2x8x8xf32>
    "tpu.trace_stop"() : () -> ()
    %38 = vector.shape_cast %37 : vector<2x8x8xf32> to vector<16x8xf32>
    %39 = arith.truncf %38 : vector<16x8xf32> to vector<16x8xbf16>
    %40 = vector.extract_strided_slice %15 {offsets = [0, 0], sizes = [8, 32], strides = [1, 1]} : vector<32x32xbf16> to vector<8x32xbf16>
    %cst_19 = arith.constant dense<0.000000e+00> : vector<16x32xf32>
    %41 = tpu.matmul %39, %40, %cst_19 {dimension_numbers = #tpu.dot_dimension_numbers<[1], [0], [0], [1], [0, 0, 1, 1], [], []>} : vector<16x8xbf16>, vector<8x32xbf16>, vector<16x32xf32> -> vector<16x32xf32>
    %42 = arith.addf %16, %41 : vector<16x32xf32>
    %43 = vector.extract_strided_slice %14 {offsets = [0, 0, 8], sizes = [2, 8, 8], strides = [1, 1, 1]} : vector<2x8x96xf32> to vector<2x8x8xf32>
    %44 = arith.truncf %43 : vector<2x8x8xf32> to vector<2x8x8xbf16>
    %45 = vector.extract_strided_slice %14 {offsets = [0, 0, 40], sizes = [2, 8, 8], strides = [1, 1, 1]} : vector<2x8x96xf32> to vector<2x8x8xf32>
    %46 = arith.truncf %45 : vector<2x8x8xf32> to vector<2x8x8xbf16>
    %47 = vector.extract_strided_slice %14 {offsets = [0, 0, 72], sizes = [2, 8, 8], strides = [1, 1, 1]} : vector<2x8x96xf32> to vector<2x8x8xf32>
    %48 = arith.truncf %47 : vector<2x8x8xf32> to vector<2x8x8xbf16>
    "tpu.trace_start"() <{level = 10 : i32, message = "bqd,bkd->bqk"}> : () -> ()
    %cst_20 = arith.constant dense<0.000000e+00> : vector<2x8x8xf32>
    %49 = tpu.matmul %44, %46, %cst_20 {dimension_numbers = #tpu.dot_dimension_numbers<[2], [2], [1], [1], [0, 0, 0, 1, 1, 1], [0], [0]>} : vector<2x8x8xbf16>, vector<2x8x8xbf16>, vector<2x8x8xf32> -> vector<2x8x8xf32>
    "tpu.trace_stop"() : () -> ()
    %50 = vector.broadcast %7 : vector<2x1x8xf32> to vector<2x8x8xf32>
    %51 = arith.addf %49, %50 : vector<2x8x8xf32>
    %cst_21 = arith.constant dense<0xFF800000> : vector<2x8xf32>
    %52 = vector.multi_reduction <maximumf>, %51, %cst_21 [2] : vector<2x8x8xf32> to vector<2x8xf32>
    %53 = vector.shape_cast %52 : vector<2x8xf32> to vector<2x8x1xf32>
    %54 = vector.broadcast %53 : vector<2x8x1xf32> to vector<2x8x8xf32>
    %55 = arith.subf %51, %54 : vector<2x8x8xf32>
    %56 = math.exp %55 : vector<2x8x8xf32>
    %cst_22 = arith.constant dense<0.000000e+00> : vector<2x8xf32>
    %57 = vector.multi_reduction <add>, %56, %cst_22 [2] : vector<2x8x8xf32> to vector<2x8xf32>
    %58 = vector.shape_cast %57 : vector<2x8xf32> to vector<2x8x1xf32>
    %59 = tpu.reciprocal %58 {approx = true} : vector<2x8x1xf32> -> vector<2x8x1xf32>
    %60 = vector.broadcast %59 : vector<2x8x1xf32> to vector<2x8x8xf32>
    %61 = arith.mulf %56, %60 : vector<2x8x8xf32>
    %62 = arith.truncf %61 : vector<2x8x8xf32> to vector<2x8x8xbf16>
    "tpu.trace_start"() <{level = 10 : i32, message = "bqk,bkd->bqd"}> : () -> ()
    %cst_23 = arith.constant dense<0.000000e+00> : vector<2x8x8xf32>
    %63 = tpu.matmul %62, %48, %cst_23 {dimension_numbers = #tpu.dot_dimension_numbers<[2], [1], [1], [2], [0, 0, 0, 1, 1, 2], [0], [0]>} : vector<2x8x8xbf16>, vector<2x8x8xbf16>, vector<2x8x8xf32> -> vector<2x8x8xf32>
    "tpu.trace_stop"() : () -> ()
    %64 = vector.shape_cast %63 : vector<2x8x8xf32> to vector<16x8xf32>
    %65 = arith.truncf %64 : vector<16x8xf32> to vector<16x8xbf16>
    %66 = vector.extract_strided_slice %15 {offsets = [8, 0], sizes = [8, 32], strides = [1, 1]} : vector<32x32xbf16> to vector<8x32xbf16>
    %cst_24 = arith.constant dense<0.000000e+00> : vector<16x32xf32>
    %67 = tpu.matmul %65, %66, %cst_24 {dimension_numbers = #tpu.dot_dimension_numbers<[1], [0], [0], [1], [0, 0, 1, 1], [], []>} : vector<16x8xbf16>, vector<8x32xbf16>, vector<16x32xf32> -> vector<16x32xf32>
    %68 = arith.addf %42, %67 : vector<16x32xf32>
    %69 = vector.extract_strided_slice %14 {offsets = [0, 0, 16], sizes = [2, 8, 8], strides = [1, 1, 1]} : vector<2x8x96xf32> to vector<2x8x8xf32>
    %70 = arith.truncf %69 : vector<2x8x8xf32> to vector<2x8x8xbf16>
    %71 = vector.extract_strided_slice %14 {offsets = [0, 0, 48], sizes = [2, 8, 8], strides = [1, 1, 1]} : vector<2x8x96xf32> to vector<2x8x8xf32>
    %72 = arith.truncf %71 : vector<2x8x8xf32> to vector<2x8x8xbf16>
    %73 = vector.extract_strided_slice %14 {offsets = [0, 0, 80], sizes = [2, 8, 8], strides = [1, 1, 1]} : vector<2x8x96xf32> to vector<2x8x8xf32>
    %74 = arith.truncf %73 : vector<2x8x8xf32> to vector<2x8x8xbf16>
    "tpu.trace_start"() <{level = 10 : i32, message = "bqd,bkd->bqk"}> : () -> ()
    %cst_25 = arith.constant dense<0.000000e+00> : vector<2x8x8xf32>
    %75 = tpu.matmul %70, %72, %cst_25 {dimension_numbers = #tpu.dot_dimension_numbers<[2], [2], [1], [1], [0, 0, 0, 1, 1, 1], [0], [0]>} : vector<2x8x8xbf16>, vector<2x8x8xbf16>, vector<2x8x8xf32> -> vector<2x8x8xf32>
    "tpu.trace_stop"() : () -> ()
    %76 = vector.broadcast %7 : vector<2x1x8xf32> to vector<2x8x8xf32>
    %77 = arith.addf %75, %76 : vector<2x8x8xf32>
    %cst_26 = arith.constant dense<0xFF800000> : vector<2x8xf32>
    %78 = vector.multi_reduction <maximumf>, %77, %cst_26 [2] : vector<2x8x8xf32> to vector<2x8xf32>
    %79 = vector.shape_cast %78 : vector<2x8xf32> to vector<2x8x1xf32>
    %80 = vector.broadcast %79 : vector<2x8x1xf32> to vector<2x8x8xf32>
    %81 = arith.subf %77, %80 : vector<2x8x8xf32>
    %82 = math.exp %81 : vector<2x8x8xf32>
    %cst_27 = arith.constant dense<0.000000e+00> : vector<2x8xf32>
    %83 = vector.multi_reduction <add>, %82, %cst_27 [2] : vector<2x8x8xf32> to vector<2x8xf32>
    %84 = vector.shape_cast %83 : vector<2x8xf32> to vector<2x8x1xf32>
    %85 = tpu.reciprocal %84 {approx = true} : vector<2x8x1xf32> -> vector<2x8x1xf32>
    %86 = vector.broadcast %85 : vector<2x8x1xf32> to vector<2x8x8xf32>
    %87 = arith.mulf %82, %86 : vector<2x8x8xf32>
    %88 = arith.truncf %87 : vector<2x8x8xf32> to vector<2x8x8xbf16>
    "tpu.trace_start"() <{level = 10 : i32, message = "bqk,bkd->bqd"}> : () -> ()
    %cst_28 = arith.constant dense<0.000000e+00> : vector<2x8x8xf32>
    %89 = tpu.matmul %88, %74, %cst_28 {dimension_numbers = #tpu.dot_dimension_numbers<[2], [1], [1], [2], [0, 0, 0, 1, 1, 2], [0], [0]>} : vector<2x8x8xbf16>, vector<2x8x8xbf16>, vector<2x8x8xf32> -> vector<2x8x8xf32>
    "tpu.trace_stop"() : () -> ()
    %90 = vector.shape_cast %89 : vector<2x8x8xf32> to vector<16x8xf32>
    %91 = arith.truncf %90 : vector<16x8xf32> to vector<16x8xbf16>
    %92 = vector.extract_strided_slice %15 {offsets = [16, 0], sizes = [8, 32], strides = [1, 1]} : vector<32x32xbf16> to vector<8x32xbf16>
    %cst_29 = arith.constant dense<0.000000e+00> : vector<16x32xf32>
    %93 = tpu.matmul %91, %92, %cst_29 {dimension_numbers = #tpu.dot_dimension_numbers<[1], [0], [0], [1], [0, 0, 1, 1], [], []>} : vector<16x8xbf16>, vector<8x32xbf16>, vector<16x32xf32> -> vector<16x32xf32>
    %94 = arith.addf %68, %93 : vector<16x32xf32>
    %95 = vector.extract_strided_slice %14 {offsets = [0, 0, 24], sizes = [2, 8, 8], strides = [1, 1, 1]} : vector<2x8x96xf32> to vector<2x8x8xf32>
    %96 = arith.truncf %95 : vector<2x8x8xf32> to vector<2x8x8xbf16>
    %97 = vector.extract_strided_slice %14 {offsets = [0, 0, 56], sizes = [2, 8, 8], strides = [1, 1, 1]} : vector<2x8x96xf32> to vector<2x8x8xf32>
    %98 = arith.truncf %97 : vector<2x8x8xf32> to vector<2x8x8xbf16>
    %99 = vector.extract_strided_slice %14 {offsets = [0, 0, 88], sizes = [2, 8, 8], strides = [1, 1, 1]} : vector<2x8x96xf32> to vector<2x8x8xf32>
    %100 = arith.truncf %99 : vector<2x8x8xf32> to vector<2x8x8xbf16>
    "tpu.trace_start"() <{level = 10 : i32, message = "bqd,bkd->bqk"}> : () -> ()
    %cst_30 = arith.constant dense<0.000000e+00> : vector<2x8x8xf32>
    %101 = tpu.matmul %96, %98, %cst_30 {dimension_numbers = #tpu.dot_dimension_numbers<[2], [2], [1], [1], [0, 0, 0, 1, 1, 1], [0], [0]>} : vector<2x8x8xbf16>, vector<2x8x8xbf16>, vector<2x8x8xf32> -> vector<2x8x8xf32>
    "tpu.trace_stop"() : () -> ()
    %102 = vector.broadcast %7 : vector<2x1x8xf32> to vector<2x8x8xf32>
    %103 = arith.addf %101, %102 : vector<2x8x8xf32>
    %cst_31 = arith.constant dense<0xFF800000> : vector<2x8xf32>
    %104 = vector.multi_reduction <maximumf>, %103, %cst_31 [2] : vector<2x8x8xf32> to vector<2x8xf32>
    %105 = vector.shape_cast %104 : vector<2x8xf32> to vector<2x8x1xf32>
    %106 = vector.broadcast %105 : vector<2x8x1xf32> to vector<2x8x8xf32>
    %107 = arith.subf %103, %106 : vector<2x8x8xf32>
    %108 = math.exp %107 : vector<2x8x8xf32>
    %cst_32 = arith.constant dense<0.000000e+00> : vector<2x8xf32>
    %109 = vector.multi_reduction <add>, %108, %cst_32 [2] : vector<2x8x8xf32> to vector<2x8xf32>
    %110 = vector.shape_cast %109 : vector<2x8xf32> to vector<2x8x1xf32>
    %111 = tpu.reciprocal %110 {approx = true} : vector<2x8x1xf32> -> vector<2x8x1xf32>
    %112 = vector.broadcast %111 : vector<2x8x1xf32> to vector<2x8x8xf32>
    %113 = arith.mulf %108, %112 : vector<2x8x8xf32>
    %114 = arith.truncf %113 : vector<2x8x8xf32> to vector<2x8x8xbf16>
    "tpu.trace_start"() <{level = 10 : i32, message = "bqk,bkd->bqd"}> : () -> ()
    %cst_33 = arith.constant dense<0.000000e+00> : vector<2x8x8xf32>
    %115 = tpu.matmul %114, %100, %cst_33 {dimension_numbers = #tpu.dot_dimension_numbers<[2], [1], [1], [2], [0, 0, 0, 1, 1, 2], [0], [0]>} : vector<2x8x8xbf16>, vector<2x8x8xbf16>, vector<2x8x8xf32> -> vector<2x8x8xf32>
    "tpu.trace_stop"() : () -> ()
    %116 = vector.shape_cast %115 : vector<2x8x8xf32> to vector<16x8xf32>
    %117 = arith.truncf %116 : vector<16x8xf32> to vector<16x8xbf16>
    %118 = vector.extract_strided_slice %15 {offsets = [24, 0], sizes = [8, 32], strides = [1, 1]} : vector<32x32xbf16> to vector<8x32xbf16>
    %cst_34 = arith.constant dense<0.000000e+00> : vector<16x32xf32>
    %119 = tpu.matmul %117, %118, %cst_34 {dimension_numbers = #tpu.dot_dimension_numbers<[1], [0], [0], [1], [0, 0, 1, 1], [], []>} : vector<16x8xbf16>, vector<8x32xbf16>, vector<16x32xf32> -> vector<16x32xf32>
    %120 = arith.addf %94, %119 : vector<16x32xf32>
    %c0_35 = arith.constant 0 : index
    %c0_36 = arith.constant 0 : index
    %121 = vector.load %arg6[%c0_35, %c0_36] : memref<1x32xf32, #tpu.memory_space<vmem>>, vector<1x32xf32>
    %122 = vector.broadcast %121 : vector<1x32xf32> to vector<16x32xf32>
    %123 = arith.addf %120, %122 : vector<16x32xf32>
    %124 = arith.addf %1, %123 : vector<16x32xf32>
    %cst_37 = arith.constant dense<0.000000e+00> : vector<16xf32>
    %125 = vector.multi_reduction <add>, %124, %cst_37 [1] : vector<16x32xf32> to vector<16xf32>
    %126 = vector.shape_cast %125 : vector<16xf32> to vector<16x1xf32>
    %cst_38 = arith.constant 3.200000e+01 : f32
    %127 = vector.broadcast %cst_38 : f32 to vector<16x1xf32>
    %128 = arith.divf %126, %127 : vector<16x1xf32>
    %129 = vector.broadcast %128 : vector<16x1xf32> to vector<16x32xf32>
    %130 = arith.subf %124, %129 : vector<16x32xf32>
    %131 = arith.mulf %130, %130 : vector<16x32xf32>
    %cst_39 = arith.constant dense<0.000000e+00> : vector<16xf32>
    %132 = vector.multi_reduction <add>, %131, %cst_39 [1] : vector<16x32xf32> to vector<16xf32>
    %133 = vector.shape_cast %132 : vector<16xf32> to vector<16x1xf32>
    %cst_40 = arith.constant 3.200000e+01 : f32
    %134 = vector.broadcast %cst_40 : f32 to vector<16x1xf32>
    %135 = arith.divf %133, %134 : vector<16x1xf32>
    %136 = vector.broadcast %128 : vector<16x1xf32> to vector<16x32xf32>
    %137 = arith.subf %124, %136 : vector<16x32xf32>
    %cst_41 = arith.constant 9.99999974E-6 : f32
    %138 = vector.broadcast %cst_41 : f32 to vector<16x1xf32>
    %139 = arith.addf %135, %138 : vector<16x1xf32>
    %140 = math.rsqrt %139 : vector<16x1xf32>
    %141 = vector.broadcast %140 : vector<16x1xf32> to vector<16x32xf32>
    %142 = arith.mulf %137, %141 : vector<16x32xf32>
    %c0_42 = arith.constant 0 : index
    %c0_43 = arith.constant 0 : index
    %143 = vector.load %arg7[%c0_42, %c0_43] : memref<1x32xf32, #tpu.memory_space<vmem>>, vector<1x32xf32>
    %144 = vector.broadcast %143 : vector<1x32xf32> to vector<16x32xf32>
    %145 = arith.mulf %142, %144 : vector<16x32xf32>
    %c0_44 = arith.constant 0 : index
    %c0_45 = arith.constant 0 : index
    %146 = vector.load %arg8[%c0_44, %c0_45] : memref<1x32xf32, #tpu.memory_space<vmem>>, vector<1x32xf32>
    %147 = vector.broadcast %146 : vector<1x32xf32> to vector<16x32xf32>
    %148 = arith.addf %145, %147 : vector<16x32xf32>
    %149 = arith.truncf %148 : vector<16x32xf32> to vector<16x32xbf16>
    %c0_46 = arith.constant 0 : index
    %c0_47 = arith.constant 0 : index
    %150 = vector.load %arg9[%c0_46, %c0_47] : memref<32x64xbf16, #tpu.memory_space<vmem>>, vector<32x64xbf16>
    %cst_48 = arith.constant dense<0.000000e+00> : vector<16x64xf32>
    %151 = tpu.matmul %149, %150, %cst_48 {dimension_numbers = #tpu.dot_dimension_numbers<[1], [0], [0], [1], [0, 0, 1, 1], [], []>} : vector<16x32xbf16>, vector<32x64xbf16>, vector<16x64xf32> -> vector<16x64xf32>
    %c0_49 = arith.constant 0 : index
    %c0_50 = arith.constant 0 : index
    %152 = vector.load %arg10[%c0_49, %c0_50] : memref<1x64xf32, #tpu.memory_space<vmem>>, vector<1x64xf32>
    %153 = vector.broadcast %152 : vector<1x64xf32> to vector<16x64xf32>
    %154 = arith.addf %151, %153 : vector<16x64xf32>
    %cst_51 = arith.constant 0.000000e+00 : f32
    %155 = vector.broadcast %cst_51 : f32 to vector<16x64xf32>
    %156 = arith.maximumf %154, %155 : vector<16x64xf32>
    %157 = arith.truncf %156 : vector<16x64xf32> to vector<16x64xbf16>
    %c0_52 = arith.constant 0 : index
    %c0_53 = arith.constant 0 : index
    %158 = vector.load %arg11[%c0_52, %c0_53] : memref<64x32xbf16, #tpu.memory_space<vmem>>, vector<64x32xbf16>
    %cst_54 = arith.constant dense<0.000000e+00> : vector<16x32xf32>
    %159 = tpu.matmul %157, %158, %cst_54 {dimension_numbers = #tpu.dot_dimension_numbers<[1], [0], [0], [1], [0, 0, 1, 1], [], []>} : vector<16x64xbf16>, vector<64x32xbf16>, vector<16x32xf32> -> vector<16x32xf32>
    %c0_55 = arith.constant 0 : index
    %c0_56 = arith.constant 0 : index
    %160 = vector.load %arg12[%c0_55, %c0_56] : memref<1x32xf32, #tpu.memory_space<vmem>>, vector<1x32xf32>
    %161 = vector.broadcast %160 : vector<1x32xf32> to vector<16x32xf32>
    %162 = arith.addf %159, %161 : vector<16x32xf32>
    %163 = arith.addf %148, %162 : vector<16x32xf32>
    %cst_57 = arith.constant dense<0.000000e+00> : vector<16xf32>
    %164 = vector.multi_reduction <add>, %163, %cst_57 [1] : vector<16x32xf32> to vector<16xf32>
    %165 = vector.shape_cast %164 : vector<16xf32> to vector<16x1xf32>
    %cst_58 = arith.constant 3.200000e+01 : f32
    %166 = vector.broadcast %cst_58 : f32 to vector<16x1xf32>
    %167 = arith.divf %165, %166 : vector<16x1xf32>
    %168 = vector.broadcast %167 : vector<16x1xf32> to vector<16x32xf32>
    %169 = arith.subf %163, %168 : vector<16x32xf32>
    %170 = arith.mulf %169, %169 : vector<16x32xf32>
    %cst_59 = arith.constant dense<0.000000e+00> : vector<16xf32>
    %171 = vector.multi_reduction <add>, %170, %cst_59 [1] : vector<16x32xf32> to vector<16xf32>
    %172 = vector.shape_cast %171 : vector<16xf32> to vector<16x1xf32>
    %cst_60 = arith.constant 3.200000e+01 : f32
    %173 = vector.broadcast %cst_60 : f32 to vector<16x1xf32>
    %174 = arith.divf %172, %173 : vector<16x1xf32>
    %175 = vector.broadcast %167 : vector<16x1xf32> to vector<16x32xf32>
    %176 = arith.subf %163, %175 : vector<16x32xf32>
    %cst_61 = arith.constant 9.99999974E-6 : f32
    %177 = vector.broadcast %cst_61 : f32 to vector<16x1xf32>
    %178 = arith.addf %174, %177 : vector<16x1xf32>
    %179 = math.rsqrt %178 : vector<16x1xf32>
    %180 = vector.broadcast %179 : vector<16x1xf32> to vector<16x32xf32>
    %181 = arith.mulf %176, %180 : vector<16x32xf32>
    %c0_62 = arith.constant 0 : index
    %c0_63 = arith.constant 0 : index
    %182 = vector.load %arg13[%c0_62, %c0_63] : memref<1x32xf32, #tpu.memory_space<vmem>>, vector<1x32xf32>
    %183 = vector.broadcast %182 : vector<1x32xf32> to vector<16x32xf32>
    %184 = arith.mulf %181, %183 : vector<16x32xf32>
    %c0_64 = arith.constant 0 : index
    %c0_65 = arith.constant 0 : index
    %185 = vector.load %arg14[%c0_64, %c0_65] : memref<1x32xf32, #tpu.memory_space<vmem>>, vector<1x32xf32>
    %186 = vector.broadcast %185 : vector<1x32xf32> to vector<16x32xf32>
    %187 = arith.addf %184, %186 : vector<16x32xf32>
    %188 = vector.shape_cast %187 : vector<16x32xf32> to vector<2x8x32xf32>
    %c0_66 = arith.constant 0 : index
    %c0_67 = arith.constant 0 : index
    %c0_68 = arith.constant 0 : index
    %189 = vector.load %arg15[%c0_66, %c0_67, %c0_68] : memref<2x8x32xf32, #tpu.memory_space<vmem>>, vector<2x8x32xf32>
    tpu.vector_store %arg15[%c0_66, %c0_67, %c0_68], %188 {strides = array<i32>} : memref<2x8x32xf32, #tpu.memory_space<vmem>>, vector<2x8x32xf32>,
    return
  }
  func.func @transform_0(%arg0: i32) -> (i32, i32, i32) {
    %c0_i32 = arith.constant 0 : i32
    %c0_i32_0 = arith.constant 0 : i32
    %c0_i32_1 = arith.constant 0 : i32
    return %arg0, %c0_i32, %c0_i32_0 : i32, i32, i32
  }
  func.func @transform_1(%arg0: i32) -> (i32, i32, i32) {
    %c0_i32 = arith.constant 0 : i32
    %c0_i32_0 = arith.constant 0 : i32
    %c0_i32_1 = arith.constant 0 : i32
    return %arg0, %c0_i32, %c0_i32_0 : i32, i32, i32
  }
  func.func @transform_2(%arg0: i32) -> (i32, i32) {
    %c0_i32 = arith.constant 0 : i32
    %c0_i32_0 = arith.constant 0 : i32
    %c0_i32_1 = arith.constant 0 : i32
    return %c0_i32, %c0_i32_0 : i32, i32
  }
  func.func @transform_3(%arg0: i32) -> (i32, i32) {
    %c0_i32 = arith.constant 0 : i32
    %c0_i32_0 = arith.constant 0 : i32
    %c0_i32_1 = arith.constant 0 : i32
    return %c0_i32, %c0_i32_0 : i32, i32
  }
  func.func @transform_4(%arg0: i32) -> (i32, i32) {
    %c0_i32 = arith.constant 0 : i32
    %c0_i32_0 = arith.constant 0 : i32
    %c0_i32_1 = arith.constant 0 : i32
    return %c0_i32, %c0_i32_0 : i32, i32
  }
  func.func @transform_5(%arg0: i32) -> (i32, i32) {
    %c0_i32 = arith.constant 0 : i32
    %c0_i32_0 = arith.constant 0 : i32
    %c0_i32_1 = arith.constant 0 : i32
    return %c0_i32, %c0_i32_0 : i32, i32
  }
  func.func @transform_6(%arg0: i32) -> (i32, i32) {
    %c0_i32 = arith.constant 0 : i32
    %c0_i32_0 = arith.constant 0 : i32
    %c0_i32_1 = arith.constant 0 : i32
    return %c0_i32, %c0_i32_0 : i32, i32
  }
  func.func @transform_7(%arg0: i32) -> (i32, i32) {
    %c0_i32 = arith.constant 0 : i32
    %c0_i32_0 = arith.constant 0 : i32
    %c0_i32_1 = arith.constant 0 : i32
    return %c0_i32, %c0_i32_0 : i32, i32
  }
  func.func @transform_8(%arg0: i32) -> (i32, i32) {
    %c0_i32 = arith.constant 0 : i32
    %c0_i32_0 = arith.constant 0 : i32
    %c0_i32_1 = arith.constant 0 : i32
    return %c0_i32, %c0_i32_0 : i32, i32
  }
  func.func @transform_9(%arg0: i32) -> (i32, i32) {
    %c0_i32 = arith.constant 0 : i32
    %c0_i32_0 = arith.constant 0 : i32
    %c0_i32_1 = arith.constant 0 : i32
    return %c0_i32, %c0_i32_0 : i32, i32
  }
  func.func @transform_10(%arg0: i32) -> (i32, i32) {
    %c0_i32 = arith.constant 0 : i32
    %c0_i32_0 = arith.constant 0 : i32
    %c0_i32_1 = arith.constant 0 : i32
    return %c0_i32, %c0_i32_0 : i32, i32
  }
  func.func @transform_11(%arg0: i32) -> (i32, i32) {
    %c0_i32 = arith.constant 0 : i32
    %c0_i32_0 = arith.constant 0 : i32
    %c0_i32_1 = arith.constant 0 : i32
    return %c0_i32, %c0_i32_0 : i32, i32
  }
  func.func @transform_12(%arg0: i32) -> (i32, i32) {
    %c0_i32 = arith.constant 0 : i32
    %c0_i32_0 = arith.constant 0 : i32
    %c0_i32_1 = arith.constant 0 : i32
    return %c0_i32, %c0_i32_0 : i32, i32
  }
  func.func @transform_13(%arg0: i32) -> (i32, i32) {
    %c0_i32 = arith.constant 0 : i32
    %c0_i32_0 = arith.constant 0 : i32
    %c0_i32_1 = arith.constant 0 : i32
    return %c0_i32, %c0_i32_0 : i32, i32
  }
  func.func @transform_14(%arg0: i32) -> (i32, i32, i32) {
    %c0_i32 = arith.constant 0 : i32
    %c0_i32_0 = arith.constant 0 : i32
    %c0_i32_1 = arith.constant 0 : i32
    return %arg0, %c0_i32, %c0_i32_0 : i32, i32, i32
  }
}

</mosaic_0001>

<bundles_post_ra>
// kernel: encoder_pallas.3
= control target key start
LH: loop header
LB: loop body
LE: loop exit
PB: predicated region body
PF: predicated region fallthrough
CT: control target
= control target key end

     0   :  { %v1821_v1 = vmov 0.0   ;;  %vm1822_vm0 = vmmov 0   ;;  %vm81_vm1 = vcmask 261120   ;;  %s2207_s0 = inlined_call_operand.vmem [shape: f32[2,8,32], index: 0, kind: input, shape index: {}]   ;;  %s2208_s1 = inlined_call_operand.vmem [shape: f32[2,1,8], index: 1, kind: input, shape index: {}]   ;;  %s2209_s2 = inlined_call_operand.vmem [shape: bf16[32,96], index: 2, kind: input, shape index: {}]   ;;  %s2210_s3 = inlined_call_operand.vmem [shape: f32[1,96], index: 3, kind: input, shape index: {}]   ;;  %s2211_s4 = inlined_call_operand.vmem [shape: bf16[32,32], index: 4, kind: input, shape index: {}]   ;;  %s2212_s5 = inlined_call_operand.vmem [shape: f32[1,32], index: 5, kind: input, shape index: {}]   ;;  %s2213_s6 = inlined_call_operand.vmem [shape: f32[1,32], index: 6, kind: input, shape index: {}]   ;;  %s2214_s7 = inlined_call_operand.vmem [shape: f32[1,32], index: 7, kind: input, shape index: {}]   ;;  %s2215_s8 = inlined_call_operand.vmem [shape: bf16[32,64], index: 8, kind: input, shape index: {}]   ;;  %s2216_s9 = inlined_call_operand.vmem [shape: f32[1,64], index: 9, kind: input, shape index: {}]   ;;  %s2217_s10 = inlined_call_operand.vmem [shape: bf16[64,32], index: 10, kind: input, shape index: {}]   ;;  %s2218_s11 = inlined_call_operand.vmem [shape: f32[1,32], index: 11, kind: input, shape index: {}]   ;;  %s2219_s12 = inlined_call_operand.vmem [shape: f32[1,32], index: 12, kind: input, shape index: {}]   ;;  %s2220_s13 = inlined_call_operand.vmem [shape: f32[1,32], index: 13, kind: input, shape index: {}]   ;;  %s2221_s14 = inlined_call_operand.hbm [shape: f32[2,8,32], index: 14, kind: output, shape index: {}]  }
   0x1   :  { %v1749_v0 = vld [vmem:[%s2209_s2] sm:$0xff]   ;;  %1585 = vmatprep.subr.bf16.mxu1 %v1821_v1  ;;  %1599 = vmatprep.subr.bf16.mxu0 %v1821_v1  ;;  %v1750_v2 = vld [vmem:[%s2209_s2 + $0x8] sm:$0xff]  }
   0x2   :  { %1586 = vmatpush3.bf16.msra.mxu1 %v1749_v0  ;;  %1589 = vmatprep.mubr.msk.bf16.mxu1 %vm1822_vm0, %v1821_v1  ;;  %v1925_v3 = vld [vmem:[%s2207_s0] sm:$0xff]  ;;  %v1930_v4 = vld [vmem:[%s2207_s0 + $0x8] sm:$0xff] }
   0x3   :  { %1587 = vmatprep.subr.bf16.mxu1 %v1821_v1  ;;  %1601 = vmatprep.mubr.msk.bf16.mxu0 %vm1822_vm0, %v1821_v1  ;;  %v57_v5 = vpack.c.bf16 %v1930_v4, %v1925_v3 }
   0x6   :  { %1588 = vmatpush3.bf16.msra.mxu1 %v1750_v2 }
   0x7   :  { %1593 = vmatprep.subr.bf16.mxu1 %v1821_v1 }
   0x8   :  { %19 = vsyncpa [#allocation3], 0  ;;  %v1495_v6 = vld [vmem:[%s2210_s3] ss:$0 sm:$0xff]  ;;  %s1823_s21 = smov 96   ;;  %vm147_vm2 = vcmask 64512   ;;  %v134_v19 = vlaneseq }
   0x9   :  { %1590 = vmatmul.mubr.msk.bf16.vlgmr.msra.gmra.mrb[0].mxu1 %vm81_vm1, %v57_v5  ;;  %v51_v20 = vld [vmem:[%s2208_s1] sm:$0x1]  ;;  %v52_v22 = vld [vmem:[%s2208_s1 + $0x1] sm:$0x1]  ;;  %s1824_s1 = smov 64   ;;  %s1825_s25 = smov 88  }
   0xa   :  { %1595 = vmatprep.mubr.msk.bf16.mxu1 %vm1822_vm0, %v1821_v1  ;;  %v135_v21 = vshrl.u32 %v134_v19, 7  ;;  %vm53_vm3 = vcmp.eq.f32.partialorder %v51_v20, 0.0  ;;  %vm54_vm4 = vcmp.eq.f32.partialorder %v52_v22, 0.0  ;;  %vm272_vm5 = vcmask 1043456   ;;  %s1826_s26 = smov 120   ;;  %s1827_s27 = smov 56  }
   0xb   :  { %v55_v24 = vsel %vm53_vm3, -1e+10, %v1821_v1  ;;  %v56_v26 = vsel %vm54_vm4, -1e+10, %v1821_v1  ;;  %s1828_s28 = smov 112   ;;  %s1829_s29 = smov 80  }
   0xc   :  { %v136_v23 = vsub.s32 0, %v135_v21  ;;  %s1830_s18 = smov 48   ;;  %s1831_s19 = smov 72   ;;  %vm1386_vm6 = vcmask 523264  }
   0xd   :  { %s1832_s20 = smov 104   ;;  %s1834_s3 = smov [#allocation2]  }
   0xe   :  { %v1969_v25 = vrot.slane %v55_v24, %v136_v23  ;;  %v1973_v30 = vrot.slane %v56_v26, %v136_v23  ;;  %s1484_s22 = sshll.u32 %s1834_s3, 4  ;;  %s1485_s22 = int_to_ptr.vmem [resolvable:$true] %s1484_s22 }
   0xf   :  { %p1802_p1 = scmp.lt.s32.totalorder %s1485_s22, %s1485_s22 }
  0xdc   :  { %v119_v7 = vpop.f32.mrb[0].mxu1 }
  0xdd   :  { %v120_v8 = vadd.f32 %v1495_v6, %v119_v7  ;;  %v1591_v9 = vpop.f32.mrb[1].mxu1 }
  0xde   :  { %v122_v10 = vpop.f32.mrb[2].mxu1 }
  0xdf   :  { %v1944_v11 = vpack.c.bf16 %v120_v8, %v120_v8  ;;  %v123_v12 = vadd.f32 %v1495_v6, %v122_v10  ;;  %v1592_v13 = vpop.f32.mrb[3].mxu1 }
  0xe1   :  { %145 = vrot.lane.b32.xlu0 %v1944_v11, %s1823_s21  ;;  %v1947_v14 = vpack.c.bf16 %v123_v12, %v123_v12 }
  0xe5   :  { %195 = vrot.lane.b32.xlu0 %v1947_v14, %s1823_s21  ;;  %s1833_s21 = smov 40  }
 0x153   :  { %v146_v15 = vpop.permute.xlu0 %145 }
 0x154   :  { %v152_v16 = vsel %vm147_vm2, %v146_v15, 0 }
 0x155   :  { %1594 = vmatpush3.bf16.xpose.msra.mxu1 %v152_v16 }
 0x156   :  { %1605 = vmatprep.subr.bf16.mxu1 %v1821_v1 }
 0x157   :  { %v196_v17 = vpop.permute.xlu0 %195 }
 0x158   :  { %v201_v18 = vsel %vm147_vm2, %v196_v17, 0 }
 0x159   :  { %1600 = vmatpush3.bf16.xpose.msra.mxu0 %v201_v18 }
 0x15a   :  { %1611 = vmatprep.subr.bf16.mxu0 %v1821_v1 }
 0x15c   :  { %1596 = vmatmul.mubr.msk.bf16.vlgmr.msra.gmra.mrb[4].mxu1 %vm147_vm2, %v1944_v11 }
 0x15d   :  { %1607 = vmatprep.mubr.msk.bf16.mxu1 %vm1822_vm0, %v1821_v1 }
 0x160   :  { %1602 = vmatmul.mubr.msk.bf16.vlgmr.msra.gmra.mrb[0].mxu0 %vm147_vm2, %v1947_v14 }
 0x161   :  { %1613 = vmatprep.mubr.msk.bf16.mxu0 %vm1822_vm0, %v1821_v1 }
 0x22f   :  { %v188_v27 = vpop.f32.mrb[4].mxu1 }
 0x230   :  { %v189_v28 = vadd.f32 %v188_v27, %v1969_v25  ;;  %v1597_v29 = vpop.f32.mrb[5].mxu1 }
 0x231   :  { %v191_v31 = vpop.f32.mrb[6].mxu1 }
 0x232   :  { %v1598_v32 = vpop.f32.mrb[7].mxu1  ;;  %v243_v33 = vsel %vm147_vm2, %v189_v28, -inf }
 0x233   :  { %v237_v34 = vpop.f32.mrb[0].mxu0  ;;  %244 = vmax.xlane.f32.xlu1 %v243_v33 }
 0x234   :  { %v238_v35 = vadd.f32 %v237_v34, %v1973_v30  ;;  %v1603_v36 = vpop.f32.mrb[1].mxu0 }
 0x235   :  { %v240_v37 = vpop.f32.mrb[2].mxu0 }
 0x236   :  { %v1604_v38 = vpop.f32.mrb[3].mxu0  ;;  %v246_v39 = vsel %vm147_vm2, %v238_v35, -inf }
 0x237   :  { %247 = vmax.xlane.f32.xlu1 %v246_v39 }
 0x248   :  { %267 = vrot.lane.b32.xlu1 %v1944_v11, %s1824_s1 }
 0x24c   :  { %316 = vrot.lane.b32.xlu1 %v1947_v14, %s1824_s1 }
 0x250   :  { %367 = vrot.lane.b32.xlu1 %v1944_v11, %s1825_s25 }
 0x2c0   :  { %v245_v40 = vpop.xlane.xlu1 %244 }
 0x2c1   :  { %v249_v41 = vsub.f32 %v189_v28, %v245_v40 }
 0x2c3   :  { %v251_v42 = vmul.f32 1.442695, %v249_v41 }
 0x2c4   :  { %v248_v43 = vpop.xlane.xlu1 %247 }
 0x2c5   :  { %1757 = vpow2.f32 %v251_v42  ;;  %v250_v44 = vsub.f32 %v238_v35, %v248_v43 }
 0x2c7   :  { %v253_v45 = vmul.f32 1.442695, %v250_v44 }
 0x2c8   :  { %v268_v46 = vpop.permute.xlu1 %267 }
 0x2c9   :  { %1759 = vpow2.f32 %v253_v45  ;;  %v274_v47 = vsel %vm272_vm5, %v268_v46, 0 }
 0x2ca   :  { %1606 = vmatpush3.bf16.msra.mxu1 %v274_v47 }
 0x2cb   :  { %1617 = vmatprep.subr.bf16.mxu1 %v1821_v1 }
 0x2cc   :  { %v317_v48 = vpop.permute.xlu1 %316 }
 0x2cd   :  { %v322_v49 = vsel %vm272_vm5, %v317_v48, 0 }
 0x2ce   :  { %1612 = vmatpush3.bf16.msra.mxu0 %v322_v49  ;;  %v127_v49 = vld [vmem:[%s2211_s4 + $0x4] sm:$0xf] }
 0x2cf   :  { %v1758_v50 = vpop.eup %1757  ;;  %1623 = vmatprep.subr.bf16.mxu0 %v1821_v1 }
 0x2d0   :  { %v255_v51 = vsel %vm147_vm2, %v1758_v50, 0.0  ;;  %v368_v54 = vpop.permute.xlu1 %367 }
 0x2d1   :  { %256 = vadd.xlane.f32.xlu0 %v255_v51  ;;  %v373_v61 = vsel %vm147_vm2, %v368_v54, 0  ;;  %v126_v54 = vld [vmem:[%s2211_s4] sm:$0xf] }
 0x2d3   :  { %v1760_v52 = vpop.eup %1759 }
 0x2d4   :  { %v258_v53 = vsel %vm147_vm2, %v1760_v52, 0.0 }
 0x2d5   :  { %259 = vadd.xlane.f32.xlu1 %v258_v53 }
 0x2e6   :  { %417 = vrot.lane.b32.xlu1 %v1947_v14, %s1825_s25 }
 0x2e7   :  { %365 = vrot.lane.b32.xlu0 %v1944_v11, %s1826_s26 }
 0x2ea   :  { %415 = vrot.lane.b32.xlu1 %v1947_v14, %s1826_s26 }
 0x35e   :  { %v257_v55 = vpop.xlane.xlu0 %256 }
 0x35f   :  { %1761 = vrcp.f32 %v257_v55 }
 0x362   :  { %v260_v56 = vpop.xlane.xlu1 %259  ;;  %v366_v5 = vpop.permute.xlu0 %365 }
 0x363   :  { %1763 = vrcp.f32 %v260_v56 }
 0x366   :  { %v418_v63 = vpop.permute.xlu1 %417 }
 0x367   :  { %v423_v2 = vsel %vm147_vm2, %v418_v63, 0 }
 0x369   :  { %v1762_v57 = vpop.eup %1761 }
 0x36a   :  { %v263_v58 = vmul.f32 %v1762_v57, %v1758_v50  ;;  %v416_v6 = vpop.permute.xlu1 %415  ;;  %v637_v57 = vsel %vm272_vm5, %v126_v54, 0 }
 0x36c   :  { %v265_v59 = vpack.c.bf16 %v263_v58, %v263_v58 }
 0x36d   :  { %v1764_v60 = vpop.eup %1763 }
 0x36e   :  { %v264_v62 = vmul.f32 %v1764_v60, %v1760_v52  ;;  %1608 = vmatmul.mubr.msk.bf16.vlgmr.msra.gmra.mrb[8].mxu1 %vm147_vm2, %v265_v59  ;;  %v590_v52 = vsel %vm272_vm5, %v127_v49, 0 }
 0x36f   :  { %1618 = vmatpush3.bf16.xpose.msra.mxu1 %v373_v61  ;;  %1619 = vmatprep.mubr.msk.bf16.mxu1 %vm1822_vm0, %v1821_v1 }
 0x370   :  { %v266_v0 = vpack.c.bf16 %v264_v62, %v264_v62  ;;  %1629 = vmatprep.subr.bf16.mxu1 %v1821_v1 }
 0x372   :  { %1614 = vmatmul.mubr.msk.bf16.vlgmr.msra.gmra.mrb[4].mxu0 %vm147_vm2, %v266_v0 }
 0x373   :  { %1624 = vmatpush3.bf16.xpose.msra.mxu0 %v423_v2  ;;  %1625 = vmatprep.mubr.msk.bf16.mxu0 %vm1822_vm0, %v1821_v1 }
 0x374   :  { %1635 = vmatprep.subr.bf16.mxu0 %v1821_v1 }
 0x376   :  { %1620 = vmatmul.mubr.msk.bf16.vlgmr.msra.gmra.mrb[12].mxu1 %vm147_vm2, %v366_v5 }
 0x377   :  { %1631 = vmatprep.mubr.msk.bf16.mxu1 %vm1822_vm0, %v1821_v1 }
 0x37a   :  { %1626 = vmatmul.mubr.msk.bf16.vlgmr.msra.gmra.mrb[8].mxu0 %vm147_vm2, %v416_v6 }
 0x37b   :  { %1637 = vmatprep.mubr.msk.bf16.mxu0 %vm1822_vm0, %v1821_v1 }
 0x441   :  { %v2006_v7 = vpop.f32.mrb[8].mxu1 }
 0x442   :  { %v1609_v8 = vpop.f32.mrb[9].mxu1 }
 0x443   :  { %v313_v9 = vpop.f32.mrb[10].mxu1 }
 0x444   :  { %v1610_v10 = vpop.f32.mrb[11].mxu1 }
 0x445   :  { %v2008_v12 = vpop.f32.mrb[4].mxu0 }
 0x446   :  { %v364_v13 = vpack.c.bf16 %v2008_v12, %v2006_v7  ;;  %v1615_v15 = vpop.f32.mrb[5].mxu0 }
 0x447   :  { %v361_v16 = vpop.f32.mrb[6].mxu0 }
 0x448   :  { %v1616_v17 = vpop.f32.mrb[7].mxu0 }
 0x449   :  { %v409_v18 = vpop.f32.mrb[12].mxu1 }
 0x44a   :  { %v410_v19 = vadd.f32 %v409_v18, %v1969_v25  ;;  %v1621_v20 = vpop.f32.mrb[13].mxu1 }
 0x44b   :  { %v412_v21 = vpop.f32.mrb[14].mxu1 }
 0x44c   :  { %v1622_v22 = vpop.f32.mrb[15].mxu1  ;;  %v465_v23 = vsel %vm147_vm2, %v410_v19, -inf }
 0x44d   :  { %v459_v24 = vpop.f32.mrb[8].mxu0  ;;  %466 = vmax.xlane.f32.xlu1 %v465_v23 }
 0x44e   :  { %v460_v26 = vadd.f32 %v459_v24, %v1973_v30  ;;  %v1627_v27 = vpop.f32.mrb[9].mxu0 }
 0x44f   :  { %v462_v28 = vpop.f32.mrb[10].mxu0 }
 0x450   :  { %v1628_v29 = vpop.f32.mrb[11].mxu0  ;;  %v468_v31 = vsel %vm147_vm2, %v460_v26, -inf }
 0x451   :  { %469 = vmax.xlane.f32.xlu0 %v468_v31 }
 0x467   :  { %537 = vrot.lane.b32.xlu0 %v1947_v14, %s1827_s27 }
 0x46b   :  { %680 = vrot.lane.b32.xlu0 %v1944_v11, %s1828_s28 }
 0x4da   :  { %v467_v32 = vpop.xlane.xlu1 %466 }
 0x4db   :  { %v471_v33 = vsub.f32 %v410_v19, %v467_v32 }
 0x4dd   :  { %v473_v34 = vmul.f32 1.442695, %v471_v33 }
 0x4de   :  { %v470_v35 = vpop.xlane.xlu0 %469 }
 0x4df   :  { %1765 = vpow2.f32 %v473_v34  ;;  %v472_v36 = vsub.f32 %v460_v26, %v470_v35 }
 0x4e1   :  { %v475_v37 = vmul.f32 1.442695, %v472_v36 }
 0x4e2   :  { %v538_v38 = vpop.permute.xlu0 %537 }
 0x4e3   :  { %1767 = vpow2.f32 %v475_v37  ;;  %v543_v39 = vsel %vm272_vm5, %v538_v38, 0 }
 0x4e4   :  { %1636 = vmatpush3.bf16.msra.mxu0 %v543_v39 }
 0x4e5   :  { %1647 = vmatprep.subr.bf16.mxu0 %v1821_v1 }
 0x4e6   :  { %v681_v15 = vpop.permute.xlu0 %680 }
 0x4e9   :  { %v1766_v40 = vpop.eup %1765 }
 0x4ea   :  { %v477_v41 = vsel %vm147_vm2, %v1766_v40, 0.0 }
 0x4eb   :  { %478 = vadd.xlane.f32.xlu1 %v477_v41 }
 0x4ed   :  { %v1768_v42 = vpop.eup %1767 }
 0x4ee   :  { %v480_v43 = vsel %vm147_vm2, %v1768_v42, 0.0 }
 0x4ef   :  { %481 = vadd.xlane.f32.xlu1 %v480_v43 }
 0x500   :  { %489 = vrot.lane.b32.xlu1 %v1944_v11, %s1827_s27 }
 0x504   :  { %682 = vrot.lane.b32.xlu1 %v1944_v11, %s1829_s29 }
 0x508   :  { %732 = vrot.lane.b32.xlu1 %v1947_v14, %s1829_s29 }
 0x50c   :  { %730 = vrot.lane.b32.xlu1 %v1947_v14, %s1828_s28 }
 0x578   :  { %v479_v44 = vpop.xlane.xlu1 %478 }
 0x579   :  { %1769 = vrcp.f32 %v479_v44 }
 0x57c   :  { %v482_v45 = vpop.xlane.xlu1 %481 }
 0x57d   :  { %1771 = vrcp.f32 %v482_v45 }
 0x580   :  { %v490_v46 = vpop.permute.xlu1 %489 }
 0x581   :  { %v495_v47 = vsel %vm272_vm5, %v490_v46, 0 }
 0x582   :  { %1630 = vmatpush3.bf16.msra.mxu1 %v495_v47 }
 0x583   :  { %v1770_v48 = vpop.eup %1769  ;;  %1641 = vmatprep.subr.bf16.mxu1 %v1821_v1 }
 0x584   :  { %v485_v50 = vmul.f32 %v1770_v48, %v1766_v40  ;;  %v683_v58 = vpop.permute.xlu1 %682 }
 0x585   :  { %v688_v9 = vsel %vm147_vm2, %v683_v58, 0 }
 0x586   :  { %v487_v51 = vpack.c.bf16 %v485_v50, %v485_v50 }
 0x587   :  { %v1772_v53 = vpop.eup %1771 }
 0x588   :  { %v486_v55 = vmul.f32 %v1772_v53, %v1768_v42  ;;  %1632 = vmatmul.mubr.msk.bf16.vlgmr.msra.gmra.mrb[16].mxu1 %vm147_vm2, %v487_v51  ;;  %v733_v59 = vpop.permute.xlu1 %732 }
 0x589   :  { %1642 = vmatpush3.bf16.msra.mxu1 %v590_v52  ;;  %1643 = vmatprep.mubr.msk.bf16.mxu1 %vm1822_vm0, %v1821_v1  ;;  %v738_v60 = vsel %vm147_vm2, %v733_v59, 0 }
 0x58a   :  { %v488_v56 = vpack.c.bf16 %v486_v55, %v486_v55  ;;  %1653 = vmatprep.subr.bf16.mxu1 %v1821_v1 }
 0x58c   :  { %1638 = vmatmul.mubr.msk.bf16.vlgmr.msra.gmra.mrb[12].mxu0 %vm147_vm2, %v488_v56  ;;  %v731_v61 = vpop.permute.xlu1 %730 }
 0x58d   :  { %1648 = vmatpush3.bf16.msra.mxu0 %v637_v57  ;;  %1649 = vmatprep.mubr.msk.bf16.mxu0 %vm1822_vm0, %v1821_v1 }
 0x58e   :  { %1659 = vmatprep.subr.bf16.mxu0 %v1821_v1 }
 0x594   :  { %1650 = vmatmul.mubr.msk.bf16.vlgmr.msra.gmra.mrb[16].mxu0 %vm147_vm2, %v364_v13 }
 0x595   :  { %1661 = vmatprep.mubr.msk.bf16.mxu0 %vm1822_vm0, %v1821_v1 }
 0x596   :  { %1660 = vmatpush3.bf16.xpose.msra.mxu0 %v738_v60 }
 0x597   :  { %1671 = vmatprep.subr.bf16.mxu0 %v1821_v1 }
 0x59d   :  { %1662 = vmatmul.mubr.msk.bf16.vlgmr.msra.gmra.mrb[20].mxu0 %vm147_vm2, %v731_v61 }
 0x59e   :  { %1673 = vmatprep.mubr.msk.bf16.mxu0 %vm1822_vm0, %v1821_v1 }
 0x65b   :  { %v531_v62 = vpop.f32.mrb[16].mxu1 }
 0x65c   :  { %v1633_v63 = vpop.f32.mrb[17].mxu1 }
 0x65d   :  { %v534_v0 = vpop.f32.mrb[18].mxu1  ;;  %v128_v63 = vld [vmem:[%s2211_s4 + $0x8] sm:$0xf] }
 0x65e   :  { %v1634_v2 = vpop.f32.mrb[19].mxu1  ;;  %v905_v0 = vsel %vm272_vm5, %v128_v63, 0 }
 0x65f   :  { %v579_v5 = vpop.f32.mrb[12].mxu0 }
 0x660   :  { %v585_v6 = vpack.c.bf16 %v579_v5, %v531_v62  ;;  %v1639_v7 = vpop.f32.mrb[13].mxu0 }
 0x661   :  { %v582_v8 = vpop.f32.mrb[14].mxu0 }
 0x662   :  { %v1640_v10 = vpop.f32.mrb[15].mxu0  ;;  %1644 = vmatmul.mubr.msk.bf16.vlgmr.msra.gmra.mrb[20].mxu1 %vm147_vm2, %v585_v6 }
 0x663   :  { %1654 = vmatpush3.bf16.xpose.msra.mxu1 %v688_v9  ;;  %1655 = vmatprep.mubr.msk.bf16.mxu1 %vm1822_vm0, %v1821_v1 }
 0x664   :  { %1665 = vmatprep.subr.bf16.mxu1 %v1821_v1 }
 0x667   :  { %v673_v12 = vpop.f32.mrb[16].mxu0 }
 0x668   :  { %v1651_v13 = vpop.f32.mrb[17].mxu0 }
 0x669   :  { %v676_v16 = vpop.f32.mrb[18].mxu0 }
 0x66a   :  { %v1652_v17 = vpop.f32.mrb[19].mxu0  ;;  %1656 = vmatmul.mubr.msk.bf16.vlgmr.msra.gmra.mrb[24].mxu1 %vm147_vm2, %v681_v15 }
 0x66b   :  { %1667 = vmatprep.mubr.msk.bf16.mxu1 %vm1822_vm0, %v1821_v1 }
 0x670   :  { %v774_v18 = vpop.f32.mrb[20].mxu0 }
 0x671   :  { %v775_v19 = vadd.f32 %v774_v18, %v1973_v30  ;;  %v1663_v20 = vpop.f32.mrb[21].mxu0 }
 0x672   :  { %v777_v21 = vpop.f32.mrb[22].mxu0 }
 0x673   :  { %v1664_v22 = vpop.f32.mrb[23].mxu0  ;;  %v783_v23 = vsel %vm147_vm2, %v775_v19, -inf }
 0x674   :  { %784 = vmax.xlane.f32.xlu1 %v783_v23 }
 0x685   :  { %804 = vrot.lane.b32.xlu1 %v1944_v11, %s1830_s18 }
 0x689   :  { %952 = vrot.lane.b32.xlu1 %v1944_v11, %s1831_s19 }
 0x68d   :  { %1002 = vrot.lane.b32.xlu1 %v1947_v14, %s1831_s19 }
 0x691   :  { %1000 = vrot.lane.b32.xlu1 %v1947_v14, %s1832_s20 }
 0x701   :  { %v785_v24 = vpop.xlane.xlu1 %784 }
 0x702   :  { %v787_v28 = vsub.f32 %v775_v19, %v785_v24 }
 0x704   :  { %v790_v29 = vmul.f32 1.442695, %v787_v28 }
 0x705   :  { %v805_v26 = vpop.permute.xlu1 %804 }
 0x706   :  { %v810_v27 = vsel %vm272_vm5, %v805_v26, 0  ;;  %1773 = vpow2.f32 %v790_v29 }
 0x707   :  { %1666 = vmatpush3.bf16.msra.mxu1 %v810_v27 }
 0x708   :  { %1677 = vmatprep.subr.bf16.mxu1 %v1821_v1 }
 0x709   :  { %v953_v58 = vpop.permute.xlu1 %952 }
 0x70a   :  { %v958_v60 = vsel %vm147_vm2, %v953_v58, 0 }
 0x70d   :  { %v1003_v8 = vpop.permute.xlu1 %1002 }
 0x70e   :  { %v1008_v15 = vsel %vm147_vm2, %v1003_v8, 0 }
 0x710   :  { %v1774_v43 = vpop.eup %1773 }
 0x711   :  { %v795_v44 = vsel %vm147_vm2, %v1774_v43, 0.0  ;;  %v1001_v23 = vpop.permute.xlu1 %1000 }
 0x735   :  { %v626_v31 = vpop.f32.mrb[20].mxu1 }
 0x736   :  { %v2073_v32 = vadd.f32 %v673_v12, %v626_v31  ;;  %v1645_v33 = vpop.f32.mrb[21].mxu1 }
 0x737   :  { %v629_v34 = vpop.f32.mrb[22].mxu1 }
 0x738   :  { %v2075_v35 = vadd.f32 %v676_v16, %v629_v34  ;;  %v1646_v36 = vpop.f32.mrb[23].mxu1 }
 0x73d   :  { %v724_v37 = vpop.f32.mrb[24].mxu1 }
 0x73e   :  { %v725_v38 = vadd.f32 %v724_v37, %v1969_v25  ;;  %v1657_v39 = vpop.f32.mrb[25].mxu1 }
 0x73f   :  { %v727_v40 = vpop.f32.mrb[26].mxu1 }
 0x740   :  { %v1658_v41 = vpop.f32.mrb[27].mxu1  ;;  %v780_v42 = vsel %vm147_vm2, %v725_v38, -inf }
 0x741   :  { %781 = vmax.xlane.f32.xlu0 %v780_v42 }
 0x745   :  { %796 = vadd.xlane.f32.xlu0 %v795_v44 }
 0x7ce   :  { %v782_v45 = vpop.xlane.xlu0 %781 }
 0x7cf   :  { %v786_v46 = vsub.f32 %v725_v38, %v782_v45 }
 0x7d1   :  { %v788_v47 = vmul.f32 1.442695, %v786_v46 }
 0x7d2   :  { %v797_v50 = vpop.xlane.xlu0 %796 }
 0x7d3   :  { %1775 = vpow2.f32 %v788_v47 }
 0x7d4   :  { %1777 = vrcp.f32 %v797_v50 }
 0x7dd   :  { %v1776_v48 = vpop.eup %1775 }
 0x7de   :  { %v792_v49 = vsel %vm147_vm2, %v1776_v48, 0.0  ;;  %v1778_v51 = vpop.eup %1777 }
 0x7df   :  { %793 = vadd.xlane.f32.xlu0 %v792_v49  ;;  %v801_v53 = vmul.f32 %v1778_v51, %v1774_v43  ;;  %v129_v51 = vld [vmem:[%s2211_s4 + $0xc] sm:$0xf]  ;;  %s1797_s4 = scalar_lea.vmem %s1485_s22, 256 }
 0x7e0   :  { %p1798_p0 = scmp.ne.s32.totalorder %s1485_s22, %s1797_s4  ;;  %p1803_p2 = scmp.lt.s32.totalorder %s1797_s4, %s1797_s4 }
 0x7e1   :  { %v803_v56 = vpack.c.bf16 %v801_v53, %v801_v53 }
 0x7e2   :  { %p1804_p3 = por %p1803_p2, %p1802_p1 }
 0x7e4   :  { %p1805_p4 = pnand %p1804_p3, %p1798_p0 }
 0x7f5   :  { %852 = vrot.lane.b32.xlu0 %v1947_v14, %s1830_s18 }
 0x7f9   :  { %950 = vrot.lane.b32.xlu0 %v1944_v11, %s1832_s20 }
 0x86c   :  { %v794_v52 = vpop.xlane.xlu0 %793 }
 0x86d   :  { %1779 = vrcp.f32 %v794_v52  ;;  %v1175_v52 = vsel %vm272_vm5, %v129_v51, 0  ;;  %v1522_v51 = vld [vmem:[%s2216_s9] ss:$0 sm:$0xff] }
 0x870   :  { %v853_v54 = vpop.permute.xlu0 %852 }
 0x871   :  { %v858_v55 = vsel %vm272_vm5, %v853_v54, 0 }
 0x872   :  { %1672 = vmatpush3.bf16.msra.mxu0 %v858_v55 }
 0x873   :  { %1683 = vmatprep.subr.bf16.mxu0 %v1821_v1 }
 0x874   :  { %v951_v62 = vpop.permute.xlu0 %950 }
 0x875   :  { %1674 = vmatmul.mubr.msk.bf16.vlgmr.msra.gmra.mrb[24].mxu0 %vm147_vm2, %v803_v56 }
 0x876   :  { %1685 = vmatprep.mubr.msk.bf16.mxu0 %vm1822_vm0, %v1821_v1 }
 0x877   :  { %v1780_v57 = vpop.eup %1779 }
 0x878   :  { %v800_v59 = vmul.f32 %v1780_v57, %v1776_v48 }
 0x87a   :  { %v802_v61 = vpack.c.bf16 %v800_v59, %v800_v59 }
 0x87b   :  { %1684 = vmatpush3.bf16.xpose.msra.mxu0 %v958_v60 }
 0x87c   :  { %1668 = vmatmul.mubr.msk.bf16.vlgmr.msra.gmra.mrb[28].mxu1 %vm147_vm2, %v802_v61  ;;  %1695 = vmatprep.subr.bf16.mxu0 %v1821_v1 }
 0x87d   :  { %1679 = vmatprep.mubr.msk.bf16.mxu1 %vm1822_vm0, %v1821_v1  ;;  %1678 = vmatpush3.bf16.msra.mxu1 %v905_v0 }
 0x87e   :  { %1689 = vmatprep.subr.bf16.mxu1 %v1821_v1 }
 0x882   :  { %1686 = vmatmul.mubr.msk.bf16.vlgmr.msra.gmra.mrb[28].mxu0 %vm147_vm2, %v951_v62 }
 0x883   :  { %1697 = vmatprep.mubr.msk.bf16.mxu0 %vm1822_vm0, %v1821_v1 }
 0x948   :  { %v894_v2 = vpop.f32.mrb[24].mxu0 }
 0x949   :  { %v1675_v5 = vpop.f32.mrb[25].mxu0 }
 0x94a   :  { %v897_v6 = vpop.f32.mrb[26].mxu0 }
 0x94b   :  { %v1676_v7 = vpop.f32.mrb[27].mxu0 }
 0x94c   :  { %v1519_v7 = vld [vmem:[%s2212_s5] ss:$0 sm:$0xff] }
 0x94f   :  { %v846_v9 = vpop.f32.mrb[28].mxu1 }
 0x950   :  { %v900_v10 = vpack.c.bf16 %v894_v2, %v846_v9  ;;  %v1669_v12 = vpop.f32.mrb[29].mxu1 }
 0x951   :  { %v849_v13 = vpop.f32.mrb[30].mxu1 }
 0x952   :  { %v1670_v16 = vpop.f32.mrb[31].mxu1  ;;  %1680 = vmatmul.mubr.msk.bf16.vlgmr.msra.gmra.mrb[32].mxu1 %vm147_vm2, %v900_v10 }
 0x953   :  { %1690 = vmatpush3.bf16.xpose.msra.mxu1 %v1008_v15  ;;  %1691 = vmatprep.mubr.msk.bf16.mxu1 %vm1822_vm0, %v1821_v1 }
 0x954   :  { %1701 = vmatprep.subr.bf16.mxu1 %v1821_v1 }
 0x955   :  { %v994_v17 = vpop.f32.mrb[28].mxu0 }
 0x956   :  { %v995_v18 = vadd.f32 %v994_v17, %v1969_v25  ;;  %v1687_v19 = vpop.f32.mrb[29].mxu0 }
 0x957   :  { %v997_v20 = vpop.f32.mrb[30].mxu0 }
 0x958   :  { %v1688_v21 = vpop.f32.mrb[31].mxu0  ;;  %v1050_v22 = vsel %vm147_vm2, %v995_v18, -inf }
 0x959   :  { %1051 = vmax.xlane.f32.xlu0 %v1050_v22 }
 0x95a   :  { %1692 = vmatmul.mubr.msk.bf16.vlgmr.msra.gmra.mrb[36].mxu1 %vm147_vm2, %v1001_v23 }
 0x95b   :  { %1703 = vmatprep.mubr.msk.bf16.mxu1 %vm1822_vm0, %v1821_v1 }
 0x9e6   :  { %v1052_v24 = vpop.xlane.xlu0 %1051 }
 0x9e7   :  { %v1056_v26 = vsub.f32 %v995_v18, %v1052_v24 }
 0x9e9   :  { %v1058_v27 = vmul.f32 1.442695, %v1056_v26 }
 0x9eb   :  { %1781 = vpow2.f32 %v1058_v27 }
 0x9f5   :  { %v1782_v28 = vpop.eup %1781 }
 0x9f6   :  { %v1062_v29 = vsel %vm147_vm2, %v1782_v28, 0.0 }
 0x9f7   :  { %1063 = vadd.xlane.f32.xlu0 %v1062_v29 }
 0xa25   :  { %v941_v25 = vpop.f32.mrb[32].mxu1 }
 0xa26   :  { %v948_v31 = vadd.f32 %v941_v25, %v2073_v32  ;;  %v1681_v33 = vpop.f32.mrb[33].mxu1 }
 0xa27   :  { %v944_v34 = vpop.f32.mrb[34].mxu1  ;;  %v1753_v33 = vld [vmem:[%s2217_s10] sm:$0xff]  }
 0xa28   :  { %v949_v36 = vadd.f32 %v944_v34, %v2075_v35  ;;  %v1682_v37 = vpop.f32.mrb[35].mxu1  ;;  %v1754_v34 = vld [vmem:[%s2217_s10 + $0x8] sm:$0xff]  }
 0xa2d   :  { %v1044_v38 = vpop.f32.mrb[36].mxu1 }
 0xa2e   :  { %v1045_v39 = vadd.f32 %v1044_v38, %v1973_v30  ;;  %v1693_v40 = vpop.f32.mrb[37].mxu1 }
 0xa2f   :  { %v1047_v41 = vpop.f32.mrb[38].mxu1 }
 0xa30   :  { %v1694_v42 = vpop.f32.mrb[39].mxu1  ;;  %v1053_v43 = vsel %vm147_vm2, %v1045_v39, -inf }
 0xa31   :  { %1054 = vmax.xlane.f32.xlu1 %v1053_v43  ;;  %v1520_v43 = vld [vmem:[%s2213_s6] ss:$0 sm:$0xff] }
 0xa42   :  { %1074 = vrot.lane.b32.xlu1 %v1944_v11, %s1833_s21 }
 0xa84   :  { %v1064_v44 = vpop.xlane.xlu0 %1063 }
 0xa85   :  { %1783 = vrcp.f32 %v1064_v44 }
 0xa8f   :  { %v1784_v32 = vpop.eup %1783 }
 0xa90   :  { %v1070_v47 = vmul.f32 %v1784_v32, %v1782_v28 }
 0xa92   :  { %v1072_v49 = vpack.c.bf16 %v1070_v47, %v1070_v47  ;;  %v1521_v47 = vld [vmem:[%s2214_s7] ss:$0 sm:$0xff] }
 0xabe   :  { %v1055_v45 = vpop.xlane.xlu1 %1054 }
 0xabf   :  { %v1057_v46 = vsub.f32 %v1045_v39, %v1055_v45 }
 0xac1   :  { %v1060_v35 = vmul.f32 1.442695, %v1057_v46 }
 0xac2   :  { %v1075_v48 = vpop.permute.xlu1 %1074 }
 0xac3   :  { %1785 = vpow2.f32 %v1060_v35  ;;  %v1080_v30 = vsel %vm272_vm5, %v1075_v48, 0 }
 0xac4   :  { %1696 = vmatpush3.bf16.msra.mxu0 %v1080_v30 }
 0xac5   :  { %1707 = vmatprep.subr.bf16.mxu0 %v1821_v1 }
 0xac7   :  { %1698 = vmatmul.mubr.msk.bf16.vlgmr.msra.gmra.mrb[32].mxu0 %vm147_vm2, %v1072_v49 }
 0xac8   :  { %1709 = vmatprep.mubr.msk.bf16.mxu0 %vm1822_vm0, %v1821_v1  ;;  %1708 = vmatpush3.bf16.msra.mxu0 %v1175_v52 }
 0xac9   :  { %1721 = vmatprep.subr.bf16.mxu0 %v1821_v1 }
 0xacd   :  { %v1786_v11 = vpop.eup %1785 }
 0xace   :  { %v1065_v50 = vsel %vm147_vm2, %v1786_v11, 0.0 }
 0xacf   :  { %1066 = vadd.xlane.f32.xlu0 %v1065_v50  ;;  %v1756_v50 = vld [vmem:[%s2217_s10 + $0x18] sm:$0xff]  }
 0xae5   :  { %1122 = vrot.lane.b32.xlu0 %v1947_v14, %s1833_s21 }
 0xb5c   :  { %v1067_v53 = vpop.xlane.xlu0 %1066 }
 0xb5d   :  { %1787 = vrcp.f32 %v1067_v53 }
 0xb60   :  { %v1123_v54 = vpop.permute.xlu0 %1122 }
 0xb61   :  { %v1128_v55 = vsel %vm272_vm5, %v1123_v54, 0 }
 0xb62   :  { %1702 = vmatpush3.bf16.msra.mxu1 %v1128_v55 }
 0xb63   :  { %1713 = vmatprep.subr.bf16.mxu1 %v1821_v1 }
 0xb67   :  { %v1788_v56 = vpop.eup %1787 }
 0xb68   :  { %v1071_v57 = vmul.f32 %v1788_v56, %v1786_v11  ;;  %v1755_v11 = vld [vmem:[%s2217_s10 + $0x10] sm:$0xff]  }
 0xb6a   :  { %v1073_v14 = vpack.c.bf16 %v1071_v57, %v1071_v57 }
 0xb6c   :  { %1704 = vmatmul.mubr.msk.bf16.vlgmr.msra.gmra.mrb[40].mxu1 %vm147_vm2, %v1073_v14 }
 0xb6d   :  { %1717 = vmatprep.mubr.msk.bf16.mxu1 %vm1822_vm0, %v1821_v1 }
 0xb9a   :  { %v1116_v58 = vpop.f32.mrb[32].mxu0 }
 0xb9b   :  { %v1699_v59 = vpop.f32.mrb[33].mxu0 }
 0xb9c   :  { %v1119_v60 = vpop.f32.mrb[34].mxu0 }
 0xb9d   :  { %v1700_v61 = vpop.f32.mrb[35].mxu0 }
 0xc3f   :  { %v1164_v62 = vpop.f32.mrb[40].mxu1 }
 0xc40   :  { %v1170_v63 = vpack.c.bf16 %v1164_v62, %v1116_v58  ;;  %v1705_v0 = vpop.f32.mrb[41].mxu1 }
 0xc41   :  { %v1167_v2 = vpop.f32.mrb[42].mxu1 }
 0xc42   :  { %v1706_v5 = vpop.f32.mrb[43].mxu1  ;;  %1710 = vmatmul.mubr.msk.bf16.vlgmr.msra.gmra.mrb[36].mxu0 %vm147_vm2, %v1170_v63 }
 0xc43   :  { %1729 = vmatprep.mubr.msk.bf16.mxu0 %vm1822_vm0, %v1821_v1  ;;  %1722 = vmatpush3.bf16.msra.mxu0 %v1753_v33 }
 0xc44   :  { %1723 = vmatprep.subr.bf16.mxu0 %v1821_v1 }
 0xc47   :  { %1724 = vmatpush3.bf16.msra.mxu0 %v1754_v34 }
 0xc48   :  { %1725 = vmatprep.subr.bf16.mxu0 %v1821_v1 }
 0xc4b   :  { %1726 = vmatpush3.bf16.msra.mxu0 %v1755_v11 }
 0xc4c   :  { %1727 = vmatprep.subr.bf16.mxu0 %v1821_v1 }
 0xc4f   :  { %1728 = vmatpush3.bf16.msra.mxu0 %v1756_v50 }
 0xd15   :  { %v1211_v6 = vpop.f32.mrb[36].mxu0 }
 0xd16   :  { %v1218_v8 = vadd.f32 %v1211_v6, %v948_v31  ;;  %v1711_v9 = vpop.f32.mrb[37].mxu0  ;;  %v1752_v31 = vld [vmem:[%s2215_s8 + $0x8] sm:$0xff]  }
 0xd17   :  { %v1214_v10 = vpop.f32.mrb[38].mxu0 }
 0xd18   :  { %v1227_v12 = vadd.f32 %v1519_v7, %v1218_v8  ;;  %v1219_v13 = vadd.f32 %v1214_v10, %v949_v36  ;;  %v1712_v15 = vpop.f32.mrb[39].mxu0 }
 0xd1a   :  { %v1228_v16 = vadd.f32 %v1519_v7, %v1219_v13  ;;  %v1229_v17 = vadd.f32 %v1227_v12, %v1925_v3 }
 0xd1c   :  { %v1231_v18 = vsel %vm81_vm1, %v1229_v17, 0.0  ;;  %v1230_v19 = vadd.f32 %v1228_v16, %v1930_v4  ;;  %v1751_v4 = vld [vmem:[%s2215_s8] sm:$0xff]  }
 0xd1d   :  { %1232 = vadd.xlane.f32.xlu1 %v1231_v18  ;;  %1714 = vmatpush3.bf16.msra.mxu1 %v1751_v4  ;;  %v1533_v4 = vld [vmem:[%s2220_s13] ss:$0 sm:$0xff] }
 0xd1e   :  { %v1234_v20 = vsel %vm81_vm1, %v1230_v19, 0.0  ;;  %1715 = vmatprep.subr.bf16.mxu1 %v1821_v1  ;;  %v1526_v1 = vld [vmem:[%s2218_s11] ss:$0 sm:$0xff] }
 0xd1f   :  { %1235 = vadd.xlane.f32.xlu0 %v1234_v20 }
 0xd21   :  { %1716 = vmatpush3.bf16.msra.mxu1 %v1752_v31 }
 0xdaa   :  { %v1233_v21 = vpop.xlane.xlu1 %1232 }
 0xdab   :  { %v1238_v22 = vmul.f32 0.03125, %v1233_v21 }
 0xdac   :  { %v1236_v23 = vpop.xlane.xlu0 %1235 }
 0xdad   :  { %v1240_v24 = vsub.f32 %v1229_v17, %v1238_v22  ;;  %v1239_v26 = vmul.f32 0.03125, %v1236_v23 }
 0xdaf   :  { %v1241_v27 = vsub.f32 %v1230_v19, %v1239_v26  ;;  %v1242_v28 = vmul.f32 %v1240_v24, %v1240_v24 }
 0xdb1   :  { %v1244_v29 = vsel %vm81_vm1, %v1242_v28, 0.0  ;;  %v1243_v25 = vmul.f32 %v1241_v27, %v1241_v27 }
 0xdb2   :  { %1245 = vadd.xlane.f32.xlu1 %v1244_v29  ;;  %v1532_v29 = vld [vmem:[%s2219_s12] ss:$0 sm:$0xff] }
 0xdb3   :  { %v1247_v3 = vsel %vm81_vm1, %v1243_v25, 0.0 }
 0xdb4   :  { %1248 = vadd.xlane.f32.xlu0 %v1247_v3 }
 0xe3f   :  { %v1246_v36 = vpop.xlane.xlu1 %1245 }
 0xe40   :  { %v1250_v37 = vmul.f32 0.03125, %v1246_v36 }
 0xe41   :  { %v1249_v38 = vpop.xlane.xlu0 %1248 }
 0xe42   :  { %v1252_v39 = vadd.f32 1e-05, %v1250_v37  ;;  %v1251_v40 = vmul.f32 0.03125, %v1249_v38 }
 0xe44   :  { %1789 = vrsqrt.f32 %v1252_v39  ;;  %v1253_v41 = vadd.f32 1e-05, %v1251_v40 }
 0xe46   :  { %1791 = vrsqrt.f32 %v1253_v41 }
 0xe4e   :  { %v1790_v42 = vpop.eup %1789 }
 0xe4f   :  { %v1256_v44 = vmul.f32 %v1790_v42, %v1240_v24 }
 0xe50   :  { %v1792_v32 = vpop.eup %1791 }
 0xe51   :  { %v1265_v45 = vmul.f32 %v1520_v43, %v1256_v44  ;;  %v1257_v46 = vmul.f32 %v1792_v32, %v1241_v27 }
 0xe53   :  { %v1266_v35 = vmul.f32 %v1520_v43, %v1257_v46  ;;  %v1274_v48 = vadd.f32 %v1521_v47, %v1265_v45 }
 0xe55   :  { %v1275_v30 = vadd.f32 %v1521_v47, %v1266_v35 }
 0xe57   :  { %v1276_v49 = vpack.c.bf16 %v1275_v30, %v1274_v48 }
 0xe59   :  { %1718 = vmatmul.mubr.msk.bf16.vlgmr.msra.gmra.mrb[44].mxu1 %vm81_vm1, %v1276_v49 }
 0xf2c   :  { %v1337_v52 = vpop.f32.mrb[44].mxu1 }
 0xf2d   :  { %v1338_v53 = vadd.f32 %v1522_v51, %v1337_v52  ;;  %v1719_v54 = vpop.f32.mrb[45].mxu1 }
 0xf2e   :  { %v1340_v55 = vpop.f32.mrb[46].mxu1 }
 0xf2f   :  { %v1341_v56 = vadd.f32 %v1522_v51, %v1340_v55  ;;  %v1720_v57 = vpop.f32.mrb[47].mxu1  ;;  %v1344_v14 = vmax.f32 %v1338_v53, 0.0 }
 0xf31   :  { %v1345_v58 = vmax.f32 %v1341_v56, 0.0 }
 0xf33   :  { %v1346_v59 = vpack.c.bf16 %v1345_v58, %v1344_v14 }
 0xf35   :  { %1730 = vmatmul.mubr.msk.bf16.vlgmr.msra.gmra.mrb[40].mxu0 %vm1386_vm6, %v1346_v59 }
0x1008   :  { %v1424_v60 = vpop.f32.mrb[40].mxu0 }
0x1009   :  { %v1425_v61 = vadd.f32 %v1526_v1, %v1424_v60  ;;  %v1731_v62 = vpop.f32.mrb[41].mxu0 }
0x100a   :  { %v1427_v63 = vpop.f32.mrb[42].mxu0 }
0x100b   :  { %v1428_v0 = vadd.f32 %v1526_v1, %v1427_v63  ;;  %v1732_v2 = vpop.f32.mrb[43].mxu0  ;;  %v1431_v5 = vadd.f32 %v1425_v61, %v1274_v48 }
0x100d   :  { %v1433_v6 = vsel %vm81_vm1, %v1431_v5, 0.0  ;;  %v1432_v7 = vadd.f32 %v1428_v0, %v1275_v30 }
0x100e   :  { %1434 = vadd.xlane.f32.xlu1 %v1433_v6 }
0x100f   :  { %v1436_v8 = vsel %vm81_vm1, %v1432_v7, 0.0 }
0x1010   :  { %1437 = vadd.xlane.f32.xlu0 %v1436_v8 }
0x109b   :  { %v1435_v9 = vpop.xlane.xlu1 %1434 }
0x109c   :  { %v1439_v10 = vmul.f32 0.03125, %v1435_v9 }
0x109d   :  { %v1438_v12 = vpop.xlane.xlu0 %1437 }
0x109e   :  { %v1441_v13 = vsub.f32 %v1431_v5, %v1439_v10  ;;  %v1440_v15 = vmul.f32 0.03125, %v1438_v12 }
0x10a0   :  { %v1442_v16 = vsub.f32 %v1432_v7, %v1440_v15  ;;  %v1443_v17 = vmul.f32 %v1441_v13, %v1441_v13 }
0x10a2   :  { %v1445_v18 = vsel %vm81_vm1, %v1443_v17, 0.0  ;;  %v1444_v19 = vmul.f32 %v1442_v16, %v1442_v16 }
0x10a3   :  { %1446 = vadd.xlane.f32.xlu1 %v1445_v18 }
0x10a4   :  { %v1448_v20 = vsel %vm81_vm1, %v1444_v19, 0.0 }
0x10a5   :  { %1449 = vadd.xlane.f32.xlu0 %v1448_v20 }
0x1130   :  { %v1447_v21 = vpop.xlane.xlu1 %1446 }
0x1131   :  { %v1451_v22 = vmul.f32 0.03125, %v1447_v21 }
0x1132   :  { %v1450_v23 = vpop.xlane.xlu0 %1449 }
0x1133   :  { %v1453_v24 = vadd.f32 1e-05, %v1451_v22  ;;  %v1452_v26 = vmul.f32 0.03125, %v1450_v23 }
0x1135   :  { %1793 = vrsqrt.f32 %v1453_v24  ;;  %v1454_v27 = vadd.f32 1e-05, %v1452_v26 }
0x1137   :  { %1795 = vrsqrt.f32 %v1454_v27 }
0x113f   :  { %v1794_v28 = vpop.eup %1793 }
0x1140   :  { %v1457_v25 = vmul.f32 %v1794_v28, %v1441_v13 }
0x1141   :  { %v1796_v3 = vpop.eup %1795 }
0x1142   :  { %v1458_v31 = vmul.f32 %v1796_v3, %v1442_v16  ;;  %v1466_v33 = vmul.f32 %v1532_v29, %v1457_v25 }
0x1144   :  { %v1467_v34 = vmul.f32 %v1532_v29, %v1458_v31  ;;  %v1475_v36 = vadd.f32 %v1533_v4, %v1466_v33 }
0x1146   :  { %v1476_v37 = vadd.f32 %v1533_v4, %v1467_v34  ;;  %1477 = vst.msk [vmem:[#allocation2] sm:$0xff] %vm81_vm1, %v1475_v36 }
0x1148   :  { %1478 = vst.msk [vmem:[#allocation2 + $0x8] sm:$0xff] %vm81_vm1, %v1476_v37 }
0x1149   :  { %1808 = shalt.err (!%p1805_p4)
}
0x114a   :  { %s1809_s23 = scalar_lea.hbm %s2221_s14, 256 }
0x114b   :  { %p1810_p5 = scmp.ne.s32.totalorder %s2221_s14, %s1809_s23  ;;  %p1813_p6 = scmp.lt.u32.totalorder %s1809_s23, %s2221_s14 }
0x114d   :  { %p1815_p7 = pnand %p1813_p6, %p1810_p5 }
0x114f   :  { %1818 = shalt.err (!%p1815_p7)
}
0x1150   :  { %s1835_s26 = smov 128   ;;  %s1836_s27 = smov 8  }
0x1151   :  { %1490 = dma.vmem_to_hbm [thread:$0]  %s1485_s22, 256, %s2221_s14, [#allocation3], %s1835_s26, %s1835_s26, %s1836_s27  }
0x1152   :  { %1819 = dma.done.wait [#allocation3], 256  }
0x1153   :  { %1820 = vsyncadd [#allocation3], 4294967040 }
0x1154   :  { %1494 = vsyncpa [#allocation3], 1 }

// kernel: encoder_pallas.2
= control target key start
LH: loop header
LB: loop body
LE: loop exit
PB: predicated region body
PF: predicated region fallthrough
CT: control target
= control target key end

     0   :  { %v1781_v0 = vmov 0.0   ;;  %vm1782_vm0 = vmmov 0   ;;  %vm80_vm1 = vcmask 261120   ;;  %vm146_vm2 = vcmask 64512   ;;  %s1785_s25 = smov 88   ;;  %s1786_s26 = smov 120   ;;  %s2161_s2 = inlined_call_operand.vmem [shape: bf16[32,96], index: 2, kind: input, shape index: {}]   ;;  %s2162_s0 = inlined_call_operand.vmem [shape: f32[2,8,32], index: 0, kind: input, shape index: {}]   ;;  %s2163_s3 = inlined_call_operand.vmem [shape: f32[1,96], index: 3, kind: input, shape index: {}]   ;;  %s2164_s1 = inlined_call_operand.vmem [shape: f32[2,1,8], index: 1, kind: input, shape index: {}]   ;;  %s2165_s4 = inlined_call_operand.vmem [shape: bf16[32,32], index: 4, kind: input, shape index: {}]   ;;  %s2166_s5 = inlined_call_operand.vmem [shape: f32[1,32], index: 5, kind: input, shape index: {}]   ;;  %s2167_s8 = inlined_call_operand.vmem [shape: bf16[32,64], index: 8, kind: input, shape index: {}]   ;;  %s2168_s10 = inlined_call_operand.vmem [shape: bf16[64,32], index: 10, kind: input, shape index: {}]   ;;  %s2169_s6 = inlined_call_operand.vmem [shape: f32[1,32], index: 6, kind: input, shape index: {}]   ;;  %s2170_s7 = inlined_call_operand.vmem [shape: f32[1,32], index: 7, kind: input, shape index: {}]   ;;  %s2171_s9 = inlined_call_operand.vmem [shape: f32[1,64], index: 9, kind: input, shape index: {}]   ;;  %s2172_s11 = inlined_call_operand.vmem [shape: f32[1,32], index: 11, kind: input, shape index: {}]   ;;  %s2173_s12 = inlined_call_operand.vmem [shape: f32[1,32], index: 12, kind: input, shape index: {}]   ;;  %s2174_s13 = inlined_call_operand.vmem [shape: f32[1,32], index: 13, kind: input, shape index: {}]   ;;  %s2175_s14 = inlined_call_operand.vmem [shape: f32[2,8,32], index: 14, kind: output, shape index: {}]  }
   0x1   :  { %1572 = vmatprep.subr.bf16.mxu1 %v1781_v0  ;;  %v1733_v1 = vld [vmem:[%s2161_s2] sm:$0xff]   ;;  %1576 = vmatprep.mubr.msk.bf16.mxu1 %vm1782_vm0, %v1781_v0  ;;  %v1734_v2 = vld [vmem:[%s2161_s2 + $0x8] sm:$0xff]   ;;  %v133_v19 = vlaneseq  ;;  %vm271_vm5 = vcmask 1043456   ;;  %s1787_s27 = smov 56   ;;  %s1788_s28 = smov 112   ;;  %vm1385_vm6 = vcmask 523264  }
   0x2   :  { %1586 = vmatprep.subr.bf16.mxu0 %v1781_v0  ;;  %1588 = vmatprep.mubr.msk.bf16.mxu0 %vm1782_vm0, %v1781_v0  ;;  %v1884_v3 = vld [vmem:[%s2162_s0] sm:$0xff]  ;;  %v1889_v4 = vld [vmem:[%s2162_s0 + $0x8] sm:$0xff]  ;;  %s1783_s0 = smov 96   ;;  %s1789_s29 = smov 80  }
   0x3   :  { %1573 = vmatpush3.bf16.msra.mxu1 %v1733_v1  ;;  %v56_v5 = vpack.c.bf16 %v1889_v4, %v1884_v3  ;;  %v1482_v6 = vld [vmem:[%s2163_s3] ss:$0 sm:$0xff]  ;;  %v134_v21 = vshrl.u32 %v133_v19, 7  ;;  %v51_v22 = vld [vmem:[%s2164_s1 + $0x1] sm:$0x1]  ;;  %s1790_s18 = smov 48  }
   0x4   :  { %1574 = vmatprep.subr.bf16.mxu1 %v1781_v0  ;;  %v50_v20 = vld [vmem:[%s2164_s1] sm:$0x1]  ;;  %vm53_vm4 = vcmp.eq.f32.partialorder %v51_v22, 0.0  ;;  %s1784_s1 = smov 64   ;;  %s1791_s19 = smov 72  }
   0x5   :  { %vm52_vm3 = vcmp.eq.f32.partialorder %v50_v20, 0.0  ;;  %v135_v23 = vsub.s32 0, %v134_v21  ;;  %v55_v26 = vsel %vm53_vm4, -1e+10, %v1781_v0  ;;  %s1792_s20 = smov 104  }
   0x6   :  { %v54_v24 = vsel %vm52_vm3, -1e+10, %v1781_v0 }
   0x7   :  { %1575 = vmatpush3.bf16.msra.mxu1 %v1734_v2  ;;  %v1926_v25 = vrot.slane %v54_v24, %v135_v23  ;;  %v1930_v30 = vrot.slane %v55_v26, %v135_v23 }
   0x8   :  { %1580 = vmatprep.subr.bf16.mxu1 %v1781_v0 }
   0xa   :  { %1577 = vmatmul.mubr.msk.bf16.vlgmr.msra.gmra.mrb[0].mxu1 %vm80_vm1, %v56_v5 }
   0xb   :  { %1582 = vmatprep.mubr.msk.bf16.mxu1 %vm1782_vm0, %v1781_v0 }
  0xdd   :  { %v118_v7 = vpop.f32.mrb[0].mxu1 }
  0xde   :  { %v119_v8 = vadd.f32 %v1482_v6, %v118_v7  ;;  %v1578_v9 = vpop.f32.mrb[1].mxu1 }
  0xdf   :  { %v121_v10 = vpop.f32.mrb[2].mxu1 }
  0xe0   :  { %v1901_v11 = vpack.c.bf16 %v119_v8, %v119_v8  ;;  %v122_v12 = vadd.f32 %v1482_v6, %v121_v10  ;;  %v1579_v13 = vpop.f32.mrb[3].mxu1 }
  0xe2   :  { %144 = vrot.lane.b32.xlu0 %v1901_v11, %s1783_s0  ;;  %v1904_v14 = vpack.c.bf16 %v122_v12, %v122_v12 }
  0xe6   :  { %194 = vrot.lane.b32.xlu0 %v1904_v14, %s1783_s0  ;;  %s1793_s0 = smov 40  }
 0x154   :  { %v145_v15 = vpop.permute.xlu0 %144 }
 0x155   :  { %v151_v16 = vsel %vm146_vm2, %v145_v15, 0 }
 0x156   :  { %1581 = vmatpush3.bf16.xpose.msra.mxu1 %v151_v16 }
 0x157   :  { %1592 = vmatprep.subr.bf16.mxu1 %v1781_v0 }
 0x158   :  { %v195_v17 = vpop.permute.xlu0 %194 }
 0x159   :  { %v200_v18 = vsel %vm146_vm2, %v195_v17, 0 }
 0x15a   :  { %1587 = vmatpush3.bf16.xpose.msra.mxu0 %v200_v18 }
 0x15b   :  { %1598 = vmatprep.subr.bf16.mxu0 %v1781_v0 }
 0x15d   :  { %1583 = vmatmul.mubr.msk.bf16.vlgmr.msra.gmra.mrb[4].mxu1 %vm146_vm2, %v1901_v11 }
 0x15e   :  { %1594 = vmatprep.mubr.msk.bf16.mxu1 %vm1782_vm0, %v1781_v0 }
 0x161   :  { %1589 = vmatmul.mubr.msk.bf16.vlgmr.msra.gmra.mrb[0].mxu0 %vm146_vm2, %v1904_v14 }
 0x162   :  { %1600 = vmatprep.mubr.msk.bf16.mxu0 %vm1782_vm0, %v1781_v0 }
 0x230   :  { %v187_v27 = vpop.f32.mrb[4].mxu1 }
 0x231   :  { %v188_v28 = vadd.f32 %v187_v27, %v1926_v25  ;;  %v1584_v29 = vpop.f32.mrb[5].mxu1 }
 0x232   :  { %v190_v31 = vpop.f32.mrb[6].mxu1 }
 0x233   :  { %v1585_v32 = vpop.f32.mrb[7].mxu1  ;;  %v242_v33 = vsel %vm146_vm2, %v188_v28, -inf }
 0x234   :  { %v236_v34 = vpop.f32.mrb[0].mxu0  ;;  %243 = vmax.xlane.f32.xlu1 %v242_v33 }
 0x235   :  { %v237_v35 = vadd.f32 %v236_v34, %v1930_v30  ;;  %v1590_v36 = vpop.f32.mrb[1].mxu0 }
 0x236   :  { %v239_v37 = vpop.f32.mrb[2].mxu0 }
 0x237   :  { %v1591_v38 = vpop.f32.mrb[3].mxu0  ;;  %v245_v39 = vsel %vm146_vm2, %v237_v35, -inf }
 0x238   :  { %246 = vmax.xlane.f32.xlu1 %v245_v39 }
 0x249   :  { %266 = vrot.lane.b32.xlu1 %v1901_v11, %s1784_s1 }
 0x24d   :  { %315 = vrot.lane.b32.xlu1 %v1904_v14, %s1784_s1 }
 0x251   :  { %366 = vrot.lane.b32.xlu1 %v1901_v11, %s1785_s25 }
 0x2c1   :  { %v244_v40 = vpop.xlane.xlu1 %243 }
 0x2c2   :  { %v248_v41 = vsub.f32 %v188_v28, %v244_v40 }
 0x2c4   :  { %v250_v42 = vmul.f32 1.442695, %v248_v41 }
 0x2c5   :  { %v247_v43 = vpop.xlane.xlu1 %246 }
 0x2c6   :  { %1741 = vpow2.f32 %v250_v42  ;;  %v249_v44 = vsub.f32 %v237_v35, %v247_v43 }
 0x2c8   :  { %v252_v45 = vmul.f32 1.442695, %v249_v44 }
 0x2c9   :  { %v267_v46 = vpop.permute.xlu1 %266 }
 0x2ca   :  { %1743 = vpow2.f32 %v252_v45  ;;  %v273_v47 = vsel %vm271_vm5, %v267_v46, 0 }
 0x2cb   :  { %1593 = vmatpush3.bf16.msra.mxu1 %v273_v47 }
 0x2cc   :  { %1604 = vmatprep.subr.bf16.mxu1 %v1781_v0 }
 0x2cd   :  { %v316_v48 = vpop.permute.xlu1 %315 }
 0x2ce   :  { %v321_v49 = vsel %vm271_vm5, %v316_v48, 0 }
 0x2cf   :  { %1599 = vmatpush3.bf16.msra.mxu0 %v321_v49  ;;  %v126_v49 = vld [vmem:[%s2165_s4 + $0x4] sm:$0xf] }
 0x2d0   :  { %v1742_v50 = vpop.eup %1741  ;;  %1610 = vmatprep.subr.bf16.mxu0 %v1781_v0 }
 0x2d1   :  { %v254_v51 = vsel %vm146_vm2, %v1742_v50, 0.0  ;;  %v367_v54 = vpop.permute.xlu1 %366 }
 0x2d2   :  { %255 = vadd.xlane.f32.xlu0 %v254_v51  ;;  %v372_v61 = vsel %vm146_vm2, %v367_v54, 0  ;;  %v125_v54 = vld [vmem:[%s2165_s4] sm:$0xf] }
 0x2d4   :  { %v1744_v52 = vpop.eup %1743 }
 0x2d5   :  { %v257_v53 = vsel %vm146_vm2, %v1744_v52, 0.0 }
 0x2d6   :  { %258 = vadd.xlane.f32.xlu1 %v257_v53 }
 0x2e7   :  { %416 = vrot.lane.b32.xlu1 %v1904_v14, %s1785_s25 }
 0x2e8   :  { %364 = vrot.lane.b32.xlu0 %v1901_v11, %s1786_s26 }
 0x2eb   :  { %414 = vrot.lane.b32.xlu1 %v1904_v14, %s1786_s26 }
 0x35f   :  { %v256_v55 = vpop.xlane.xlu0 %255 }
 0x360   :  { %1745 = vrcp.f32 %v256_v55 }
 0x363   :  { %v259_v56 = vpop.xlane.xlu1 %258  ;;  %v365_v5 = vpop.permute.xlu0 %364 }
 0x364   :  { %1747 = vrcp.f32 %v259_v56 }
 0x367   :  { %v417_v63 = vpop.permute.xlu1 %416 }
 0x368   :  { %v422_v2 = vsel %vm146_vm2, %v417_v63, 0 }
 0x36a   :  { %v1746_v57 = vpop.eup %1745 }
 0x36b   :  { %v262_v58 = vmul.f32 %v1746_v57, %v1742_v50  ;;  %v415_v6 = vpop.permute.xlu1 %414  ;;  %v636_v57 = vsel %vm271_vm5, %v125_v54, 0 }
 0x36d   :  { %v264_v59 = vpack.c.bf16 %v262_v58, %v262_v58 }
 0x36e   :  { %v1748_v60 = vpop.eup %1747 }
 0x36f   :  { %v263_v62 = vmul.f32 %v1748_v60, %v1744_v52  ;;  %1595 = vmatmul.mubr.msk.bf16.vlgmr.msra.gmra.mrb[8].mxu1 %vm146_vm2, %v264_v59  ;;  %v589_v52 = vsel %vm271_vm5, %v126_v49, 0 }
 0x370   :  { %1605 = vmatpush3.bf16.xpose.msra.mxu1 %v372_v61  ;;  %1606 = vmatprep.mubr.msk.bf16.mxu1 %vm1782_vm0, %v1781_v0 }
 0x371   :  { %v265_v1 = vpack.c.bf16 %v263_v62, %v263_v62  ;;  %1616 = vmatprep.subr.bf16.mxu1 %v1781_v0 }
 0x373   :  { %1601 = vmatmul.mubr.msk.bf16.vlgmr.msra.gmra.mrb[4].mxu0 %vm146_vm2, %v265_v1 }
 0x374   :  { %1611 = vmatpush3.bf16.xpose.msra.mxu0 %v422_v2  ;;  %1612 = vmatprep.mubr.msk.bf16.mxu0 %vm1782_vm0, %v1781_v0 }
 0x375   :  { %1622 = vmatprep.subr.bf16.mxu0 %v1781_v0 }
 0x377   :  { %1607 = vmatmul.mubr.msk.bf16.vlgmr.msra.gmra.mrb[12].mxu1 %vm146_vm2, %v365_v5 }
 0x378   :  { %1618 = vmatprep.mubr.msk.bf16.mxu1 %vm1782_vm0, %v1781_v0 }
 0x37b   :  { %1613 = vmatmul.mubr.msk.bf16.vlgmr.msra.gmra.mrb[8].mxu0 %vm146_vm2, %v415_v6 }
 0x37c   :  { %1624 = vmatprep.mubr.msk.bf16.mxu0 %vm1782_vm0, %v1781_v0 }
 0x442   :  { %v1963_v7 = vpop.f32.mrb[8].mxu1 }
 0x443   :  { %v1596_v8 = vpop.f32.mrb[9].mxu1 }
 0x444   :  { %v312_v9 = vpop.f32.mrb[10].mxu1 }
 0x445   :  { %v1597_v10 = vpop.f32.mrb[11].mxu1 }
 0x446   :  { %v1965_v12 = vpop.f32.mrb[4].mxu0 }
 0x447   :  { %v363_v13 = vpack.c.bf16 %v1965_v12, %v1963_v7  ;;  %v1602_v15 = vpop.f32.mrb[5].mxu0 }
 0x448   :  { %v360_v16 = vpop.f32.mrb[6].mxu0 }
 0x449   :  { %v1603_v17 = vpop.f32.mrb[7].mxu0 }
 0x44a   :  { %v408_v18 = vpop.f32.mrb[12].mxu1 }
 0x44b   :  { %v409_v19 = vadd.f32 %v408_v18, %v1926_v25  ;;  %v1608_v20 = vpop.f32.mrb[13].mxu1 }
 0x44c   :  { %v411_v21 = vpop.f32.mrb[14].mxu1 }
 0x44d   :  { %v1609_v22 = vpop.f32.mrb[15].mxu1  ;;  %v464_v23 = vsel %vm146_vm2, %v409_v19, -inf }
 0x44e   :  { %v458_v24 = vpop.f32.mrb[8].mxu0  ;;  %465 = vmax.xlane.f32.xlu1 %v464_v23 }
 0x44f   :  { %v459_v26 = vadd.f32 %v458_v24, %v1930_v30  ;;  %v1614_v27 = vpop.f32.mrb[9].mxu0 }
 0x450   :  { %v461_v28 = vpop.f32.mrb[10].mxu0 }
 0x451   :  { %v1615_v29 = vpop.f32.mrb[11].mxu0  ;;  %v467_v31 = vsel %vm146_vm2, %v459_v26, -inf }
 0x452   :  { %468 = vmax.xlane.f32.xlu0 %v467_v31 }
 0x468   :  { %536 = vrot.lane.b32.xlu0 %v1904_v14, %s1787_s27 }
 0x46c   :  { %679 = vrot.lane.b32.xlu0 %v1901_v11, %s1788_s28 }
 0x4db   :  { %v466_v32 = vpop.xlane.xlu1 %465 }
 0x4dc   :  { %v470_v33 = vsub.f32 %v409_v19, %v466_v32 }
 0x4de   :  { %v472_v34 = vmul.f32 1.442695, %v470_v33 }
 0x4df   :  { %v469_v35 = vpop.xlane.xlu0 %468 }
 0x4e0   :  { %1749 = vpow2.f32 %v472_v34  ;;  %v471_v36 = vsub.f32 %v459_v26, %v469_v35 }
 0x4e2   :  { %v474_v37 = vmul.f32 1.442695, %v471_v36 }
 0x4e3   :  { %v537_v38 = vpop.permute.xlu0 %536 }
 0x4e4   :  { %1751 = vpow2.f32 %v474_v37  ;;  %v542_v39 = vsel %vm271_vm5, %v537_v38, 0 }
 0x4e5   :  { %1623 = vmatpush3.bf16.msra.mxu0 %v542_v39 }
 0x4e6   :  { %1634 = vmatprep.subr.bf16.mxu0 %v1781_v0 }
 0x4e7   :  { %v680_v15 = vpop.permute.xlu0 %679 }
 0x4ea   :  { %v1750_v40 = vpop.eup %1749 }
 0x4eb   :  { %v476_v41 = vsel %vm146_vm2, %v1750_v40, 0.0 }
 0x4ec   :  { %477 = vadd.xlane.f32.xlu1 %v476_v41 }
 0x4ee   :  { %v1752_v42 = vpop.eup %1751 }
 0x4ef   :  { %v479_v43 = vsel %vm146_vm2, %v1752_v42, 0.0 }
 0x4f0   :  { %480 = vadd.xlane.f32.xlu1 %v479_v43 }
 0x501   :  { %488 = vrot.lane.b32.xlu1 %v1901_v11, %s1787_s27 }
 0x505   :  { %681 = vrot.lane.b32.xlu1 %v1901_v11, %s1789_s29 }
 0x509   :  { %731 = vrot.lane.b32.xlu1 %v1904_v14, %s1789_s29 }
 0x50d   :  { %729 = vrot.lane.b32.xlu1 %v1904_v14, %s1788_s28 }
 0x579   :  { %v478_v44 = vpop.xlane.xlu1 %477 }
 0x57a   :  { %1753 = vrcp.f32 %v478_v44 }
 0x57d   :  { %v481_v45 = vpop.xlane.xlu1 %480 }
 0x57e   :  { %1755 = vrcp.f32 %v481_v45 }
 0x581   :  { %v489_v46 = vpop.permute.xlu1 %488 }
 0x582   :  { %v494_v47 = vsel %vm271_vm5, %v489_v46, 0 }
 0x583   :  { %1617 = vmatpush3.bf16.msra.mxu1 %v494_v47 }
 0x584   :  { %v1754_v48 = vpop.eup %1753  ;;  %1628 = vmatprep.subr.bf16.mxu1 %v1781_v0 }
 0x585   :  { %v484_v50 = vmul.f32 %v1754_v48, %v1750_v40  ;;  %v682_v58 = vpop.permute.xlu1 %681 }
 0x586   :  { %v687_v9 = vsel %vm146_vm2, %v682_v58, 0 }
 0x587   :  { %v486_v51 = vpack.c.bf16 %v484_v50, %v484_v50 }
 0x588   :  { %v1756_v53 = vpop.eup %1755 }
 0x589   :  { %v485_v55 = vmul.f32 %v1756_v53, %v1752_v42  ;;  %1619 = vmatmul.mubr.msk.bf16.vlgmr.msra.gmra.mrb[16].mxu1 %vm146_vm2, %v486_v51  ;;  %v732_v59 = vpop.permute.xlu1 %731 }
 0x58a   :  { %1629 = vmatpush3.bf16.msra.mxu1 %v589_v52  ;;  %1630 = vmatprep.mubr.msk.bf16.mxu1 %vm1782_vm0, %v1781_v0  ;;  %v737_v60 = vsel %vm146_vm2, %v732_v59, 0 }
 0x58b   :  { %v487_v56 = vpack.c.bf16 %v485_v55, %v485_v55  ;;  %1640 = vmatprep.subr.bf16.mxu1 %v1781_v0 }
 0x58d   :  { %1625 = vmatmul.mubr.msk.bf16.vlgmr.msra.gmra.mrb[12].mxu0 %vm146_vm2, %v487_v56  ;;  %v730_v61 = vpop.permute.xlu1 %729 }
 0x58e   :  { %1635 = vmatpush3.bf16.msra.mxu0 %v636_v57  ;;  %1636 = vmatprep.mubr.msk.bf16.mxu0 %vm1782_vm0, %v1781_v0 }
 0x58f   :  { %1646 = vmatprep.subr.bf16.mxu0 %v1781_v0 }
 0x595   :  { %1637 = vmatmul.mubr.msk.bf16.vlgmr.msra.gmra.mrb[16].mxu0 %vm146_vm2, %v363_v13 }
 0x596   :  { %1648 = vmatprep.mubr.msk.bf16.mxu0 %vm1782_vm0, %v1781_v0 }
 0x597   :  { %1647 = vmatpush3.bf16.xpose.msra.mxu0 %v737_v60 }
 0x598   :  { %1658 = vmatprep.subr.bf16.mxu0 %v1781_v0 }
 0x59e   :  { %1649 = vmatmul.mubr.msk.bf16.vlgmr.msra.gmra.mrb[20].mxu0 %vm146_vm2, %v730_v61 }
 0x59f   :  { %1660 = vmatprep.mubr.msk.bf16.mxu0 %vm1782_vm0, %v1781_v0 }
 0x65c   :  { %v530_v62 = vpop.f32.mrb[16].mxu1 }
 0x65d   :  { %v1620_v63 = vpop.f32.mrb[17].mxu1 }
 0x65e   :  { %v533_v1 = vpop.f32.mrb[18].mxu1  ;;  %v127_v63 = vld [vmem:[%s2165_s4 + $0x8] sm:$0xf] }
 0x65f   :  { %v1621_v2 = vpop.f32.mrb[19].mxu1  ;;  %v904_v1 = vsel %vm271_vm5, %v127_v63, 0 }
 0x660   :  { %v578_v5 = vpop.f32.mrb[12].mxu0 }
 0x661   :  { %v584_v6 = vpack.c.bf16 %v578_v5, %v530_v62  ;;  %v1626_v7 = vpop.f32.mrb[13].mxu0 }
 0x662   :  { %v581_v8 = vpop.f32.mrb[14].mxu0 }
 0x663   :  { %v1627_v10 = vpop.f32.mrb[15].mxu0  ;;  %1631 = vmatmul.mubr.msk.bf16.vlgmr.msra.gmra.mrb[20].mxu1 %vm146_vm2, %v584_v6 }
 0x664   :  { %1641 = vmatpush3.bf16.xpose.msra.mxu1 %v687_v9  ;;  %1642 = vmatprep.mubr.msk.bf16.mxu1 %vm1782_vm0, %v1781_v0 }
 0x665   :  { %1652 = vmatprep.subr.bf16.mxu1 %v1781_v0 }
 0x668   :  { %v672_v12 = vpop.f32.mrb[16].mxu0 }
 0x669   :  { %v1638_v13 = vpop.f32.mrb[17].mxu0 }
 0x66a   :  { %v675_v16 = vpop.f32.mrb[18].mxu0 }
 0x66b   :  { %v1639_v17 = vpop.f32.mrb[19].mxu0  ;;  %1643 = vmatmul.mubr.msk.bf16.vlgmr.msra.gmra.mrb[24].mxu1 %vm146_vm2, %v680_v15 }
 0x66c   :  { %1654 = vmatprep.mubr.msk.bf16.mxu1 %vm1782_vm0, %v1781_v0 }
 0x671   :  { %v773_v18 = vpop.f32.mrb[20].mxu0 }
 0x672   :  { %v774_v19 = vadd.f32 %v773_v18, %v1930_v30  ;;  %v1650_v20 = vpop.f32.mrb[21].mxu0 }
 0x673   :  { %v776_v21 = vpop.f32.mrb[22].mxu0 }
 0x674   :  { %v1651_v22 = vpop.f32.mrb[23].mxu0  ;;  %v782_v23 = vsel %vm146_vm2, %v774_v19, -inf }
 0x675   :  { %783 = vmax.xlane.f32.xlu1 %v782_v23 }
 0x686   :  { %803 = vrot.lane.b32.xlu1 %v1901_v11, %s1790_s18 }
 0x68a   :  { %951 = vrot.lane.b32.xlu1 %v1901_v11, %s1791_s19 }
 0x68e   :  { %1001 = vrot.lane.b32.xlu1 %v1904_v14, %s1791_s19 }
 0x692   :  { %999 = vrot.lane.b32.xlu1 %v1904_v14, %s1792_s20 }
 0x702   :  { %v784_v24 = vpop.xlane.xlu1 %783 }
 0x703   :  { %v786_v28 = vsub.f32 %v774_v19, %v784_v24 }
 0x705   :  { %v789_v29 = vmul.f32 1.442695, %v786_v28 }
 0x706   :  { %v804_v26 = vpop.permute.xlu1 %803 }
 0x707   :  { %v809_v27 = vsel %vm271_vm5, %v804_v26, 0  ;;  %1757 = vpow2.f32 %v789_v29 }
 0x708   :  { %1653 = vmatpush3.bf16.msra.mxu1 %v809_v27 }
 0x709   :  { %1664 = vmatprep.subr.bf16.mxu1 %v1781_v0 }
 0x70a   :  { %v952_v58 = vpop.permute.xlu1 %951 }
 0x70b   :  { %v957_v60 = vsel %vm146_vm2, %v952_v58, 0 }
 0x70e   :  { %v1002_v8 = vpop.permute.xlu1 %1001 }
 0x70f   :  { %v1007_v15 = vsel %vm146_vm2, %v1002_v8, 0 }
 0x711   :  { %v1758_v43 = vpop.eup %1757 }
 0x712   :  { %v794_v44 = vsel %vm146_vm2, %v1758_v43, 0.0  ;;  %v1000_v23 = vpop.permute.xlu1 %999 }
 0x736   :  { %v625_v31 = vpop.f32.mrb[20].mxu1 }
 0x737   :  { %v2030_v32 = vadd.f32 %v672_v12, %v625_v31  ;;  %v1632_v33 = vpop.f32.mrb[21].mxu1 }
 0x738   :  { %v628_v34 = vpop.f32.mrb[22].mxu1 }
 0x739   :  { %v2032_v35 = vadd.f32 %v675_v16, %v628_v34  ;;  %v1633_v36 = vpop.f32.mrb[23].mxu1 }
 0x73e   :  { %v723_v37 = vpop.f32.mrb[24].mxu1 }
 0x73f   :  { %v724_v38 = vadd.f32 %v723_v37, %v1926_v25  ;;  %v1644_v39 = vpop.f32.mrb[25].mxu1 }
 0x740   :  { %v726_v40 = vpop.f32.mrb[26].mxu1 }
 0x741   :  { %v1645_v41 = vpop.f32.mrb[27].mxu1  ;;  %v779_v42 = vsel %vm146_vm2, %v724_v38, -inf }
 0x742   :  { %780 = vmax.xlane.f32.xlu0 %v779_v42 }
 0x746   :  { %795 = vadd.xlane.f32.xlu0 %v794_v44 }
 0x7cf   :  { %v781_v45 = vpop.xlane.xlu0 %780 }
 0x7d0   :  { %v785_v46 = vsub.f32 %v724_v38, %v781_v45 }
 0x7d2   :  { %v787_v47 = vmul.f32 1.442695, %v785_v46 }
 0x7d3   :  { %v796_v50 = vpop.xlane.xlu0 %795 }
 0x7d4   :  { %1759 = vpow2.f32 %v787_v47 }
 0x7d5   :  { %1761 = vrcp.f32 %v796_v50 }
 0x7de   :  { %v1760_v48 = vpop.eup %1759 }
 0x7df   :  { %v791_v49 = vsel %vm146_vm2, %v1760_v48, 0.0  ;;  %v1762_v51 = vpop.eup %1761 }
 0x7e0   :  { %792 = vadd.xlane.f32.xlu0 %v791_v49  ;;  %v800_v53 = vmul.f32 %v1762_v51, %v1758_v43  ;;  %v128_v51 = vld [vmem:[%s2165_s4 + $0xc] sm:$0xf] }
 0x7e2   :  { %v802_v56 = vpack.c.bf16 %v800_v53, %v800_v53 }
 0x7f6   :  { %851 = vrot.lane.b32.xlu0 %v1904_v14, %s1790_s18 }
 0x7fa   :  { %949 = vrot.lane.b32.xlu0 %v1901_v11, %s1792_s20 }
 0x86d   :  { %v793_v52 = vpop.xlane.xlu0 %792 }
 0x86e   :  { %1763 = vrcp.f32 %v793_v52  ;;  %v1174_v52 = vsel %vm271_vm5, %v128_v51, 0  ;;  %v1509_v51 = vld [vmem:[%s2171_s9] ss:$0 sm:$0xff] }
 0x871   :  { %v852_v54 = vpop.permute.xlu0 %851 }
 0x872   :  { %v857_v55 = vsel %vm271_vm5, %v852_v54, 0 }
 0x873   :  { %1659 = vmatpush3.bf16.msra.mxu0 %v857_v55 }
 0x874   :  { %1670 = vmatprep.subr.bf16.mxu0 %v1781_v0 }
 0x875   :  { %v950_v62 = vpop.permute.xlu0 %949 }
 0x876   :  { %1661 = vmatmul.mubr.msk.bf16.vlgmr.msra.gmra.mrb[24].mxu0 %vm146_vm2, %v802_v56 }
 0x877   :  { %1672 = vmatprep.mubr.msk.bf16.mxu0 %vm1782_vm0, %v1781_v0 }
 0x878   :  { %v1764_v57 = vpop.eup %1763 }
 0x879   :  { %v799_v59 = vmul.f32 %v1764_v57, %v1760_v48 }
 0x87b   :  { %v801_v61 = vpack.c.bf16 %v799_v59, %v799_v59 }
 0x87c   :  { %1671 = vmatpush3.bf16.xpose.msra.mxu0 %v957_v60 }
 0x87d   :  { %1655 = vmatmul.mubr.msk.bf16.vlgmr.msra.gmra.mrb[28].mxu1 %vm146_vm2, %v801_v61  ;;  %1682 = vmatprep.subr.bf16.mxu0 %v1781_v0 }
 0x87e   :  { %1666 = vmatprep.mubr.msk.bf16.mxu1 %vm1782_vm0, %v1781_v0  ;;  %1665 = vmatpush3.bf16.msra.mxu1 %v904_v1 }
 0x87f   :  { %1676 = vmatprep.subr.bf16.mxu1 %v1781_v0 }
 0x883   :  { %1673 = vmatmul.mubr.msk.bf16.vlgmr.msra.gmra.mrb[28].mxu0 %vm146_vm2, %v950_v62 }
 0x884   :  { %1684 = vmatprep.mubr.msk.bf16.mxu0 %vm1782_vm0, %v1781_v0 }
 0x949   :  { %v893_v2 = vpop.f32.mrb[24].mxu0 }
 0x94a   :  { %v1662_v5 = vpop.f32.mrb[25].mxu0 }
 0x94b   :  { %v896_v6 = vpop.f32.mrb[26].mxu0 }
 0x94c   :  { %v1663_v7 = vpop.f32.mrb[27].mxu0 }
 0x94d   :  { %v1506_v7 = vld [vmem:[%s2166_s5] ss:$0 sm:$0xff] }
 0x950   :  { %v845_v9 = vpop.f32.mrb[28].mxu1 }
 0x951   :  { %v899_v10 = vpack.c.bf16 %v893_v2, %v845_v9  ;;  %v1656_v12 = vpop.f32.mrb[29].mxu1 }
 0x952   :  { %v848_v13 = vpop.f32.mrb[30].mxu1 }
 0x953   :  { %v1657_v16 = vpop.f32.mrb[31].mxu1  ;;  %1667 = vmatmul.mubr.msk.bf16.vlgmr.msra.gmra.mrb[32].mxu1 %vm146_vm2, %v899_v10 }
 0x954   :  { %1677 = vmatpush3.bf16.xpose.msra.mxu1 %v1007_v15  ;;  %1678 = vmatprep.mubr.msk.bf16.mxu1 %vm1782_vm0, %v1781_v0 }
 0x955   :  { %1688 = vmatprep.subr.bf16.mxu1 %v1781_v0 }
 0x956   :  { %v993_v17 = vpop.f32.mrb[28].mxu0 }
 0x957   :  { %v994_v18 = vadd.f32 %v993_v17, %v1926_v25  ;;  %v1674_v19 = vpop.f32.mrb[29].mxu0 }
 0x958   :  { %v996_v20 = vpop.f32.mrb[30].mxu0 }
 0x959   :  { %v1675_v21 = vpop.f32.mrb[31].mxu0  ;;  %v1049_v22 = vsel %vm146_vm2, %v994_v18, -inf }
 0x95a   :  { %1050 = vmax.xlane.f32.xlu0 %v1049_v22 }
 0x95b   :  { %1679 = vmatmul.mubr.msk.bf16.vlgmr.msra.gmra.mrb[36].mxu1 %vm146_vm2, %v1000_v23 }
 0x95c   :  { %1690 = vmatprep.mubr.msk.bf16.mxu1 %vm1782_vm0, %v1781_v0 }
 0x9e7   :  { %v1051_v24 = vpop.xlane.xlu0 %1050 }
 0x9e8   :  { %v1055_v26 = vsub.f32 %v994_v18, %v1051_v24 }
 0x9ea   :  { %v1057_v27 = vmul.f32 1.442695, %v1055_v26 }
 0x9ec   :  { %1765 = vpow2.f32 %v1057_v27 }
 0x9f6   :  { %v1766_v28 = vpop.eup %1765 }
 0x9f7   :  { %v1061_v29 = vsel %vm146_vm2, %v1766_v28, 0.0 }
 0x9f8   :  { %1062 = vadd.xlane.f32.xlu0 %v1061_v29 }
 0xa26   :  { %v940_v25 = vpop.f32.mrb[32].mxu1 }
 0xa27   :  { %v947_v31 = vadd.f32 %v940_v25, %v2030_v32  ;;  %v1668_v33 = vpop.f32.mrb[33].mxu1 }
 0xa28   :  { %v943_v34 = vpop.f32.mrb[34].mxu1  ;;  %v1737_v33 = vld [vmem:[%s2168_s10] sm:$0xff]  }
 0xa29   :  { %v2073_v36 = vadd.f32 %v943_v34, %v2032_v35  ;;  %v1669_v37 = vpop.f32.mrb[35].mxu1  ;;  %v1738_v34 = vld [vmem:[%s2168_s10 + $0x8] sm:$0xff]  }
 0xa2e   :  { %v1043_v38 = vpop.f32.mrb[36].mxu1 }
 0xa2f   :  { %v1044_v39 = vadd.f32 %v1043_v38, %v1930_v30  ;;  %v1680_v40 = vpop.f32.mrb[37].mxu1 }
 0xa30   :  { %v1046_v41 = vpop.f32.mrb[38].mxu1 }
 0xa31   :  { %v1681_v42 = vpop.f32.mrb[39].mxu1  ;;  %v1052_v43 = vsel %vm146_vm2, %v1044_v39, -inf }
 0xa32   :  { %1053 = vmax.xlane.f32.xlu1 %v1052_v43  ;;  %v1507_v43 = vld [vmem:[%s2169_s6] ss:$0 sm:$0xff] }
 0xa43   :  { %1073 = vrot.lane.b32.xlu1 %v1901_v11, %s1793_s0 }
 0xa85   :  { %v1063_v44 = vpop.xlane.xlu0 %1062 }
 0xa86   :  { %1767 = vrcp.f32 %v1063_v44 }
 0xa90   :  { %v1768_v32 = vpop.eup %1767 }
 0xa91   :  { %v1069_v35 = vmul.f32 %v1768_v32, %v1766_v28 }
 0xa93   :  { %v1071_v49 = vpack.c.bf16 %v1069_v35, %v1069_v35  ;;  %v1508_v35 = vld [vmem:[%s2170_s7] ss:$0 sm:$0xff] }
 0xabf   :  { %v1054_v45 = vpop.xlane.xlu1 %1053 }
 0xac0   :  { %v1056_v46 = vsub.f32 %v1044_v39, %v1054_v45 }
 0xac2   :  { %v1059_v47 = vmul.f32 1.442695, %v1056_v46 }
 0xac3   :  { %v1074_v48 = vpop.permute.xlu1 %1073 }
 0xac4   :  { %1769 = vpow2.f32 %v1059_v47  ;;  %v1079_v30 = vsel %vm271_vm5, %v1074_v48, 0 }
 0xac5   :  { %1683 = vmatpush3.bf16.msra.mxu0 %v1079_v30 }
 0xac6   :  { %1694 = vmatprep.subr.bf16.mxu0 %v1781_v0 }
 0xac8   :  { %1685 = vmatmul.mubr.msk.bf16.vlgmr.msra.gmra.mrb[32].mxu0 %vm146_vm2, %v1071_v49 }
 0xac9   :  { %1696 = vmatprep.mubr.msk.bf16.mxu0 %vm1782_vm0, %v1781_v0  ;;  %1695 = vmatpush3.bf16.msra.mxu0 %v1174_v52 }
 0xaca   :  { %1708 = vmatprep.subr.bf16.mxu0 %v1781_v0 }
 0xace   :  { %v1770_v11 = vpop.eup %1769 }
 0xacf   :  { %v1064_v50 = vsel %vm146_vm2, %v1770_v11, 0.0 }
 0xad0   :  { %1065 = vadd.xlane.f32.xlu0 %v1064_v50  ;;  %v1740_v50 = vld [vmem:[%s2168_s10 + $0x18] sm:$0xff]  }
 0xae6   :  { %1121 = vrot.lane.b32.xlu0 %v1904_v14, %s1793_s0 }
 0xb5d   :  { %v1066_v53 = vpop.xlane.xlu0 %1065 }
 0xb5e   :  { %1771 = vrcp.f32 %v1066_v53 }
 0xb61   :  { %v1122_v54 = vpop.permute.xlu0 %1121 }
 0xb62   :  { %v1127_v55 = vsel %vm271_vm5, %v1122_v54, 0 }
 0xb63   :  { %1689 = vmatpush3.bf16.msra.mxu1 %v1127_v55 }
 0xb64   :  { %1700 = vmatprep.subr.bf16.mxu1 %v1781_v0 }
 0xb68   :  { %v1772_v56 = vpop.eup %1771 }
 0xb69   :  { %v1070_v57 = vmul.f32 %v1772_v56, %v1770_v11  ;;  %v1739_v11 = vld [vmem:[%s2168_s10 + $0x10] sm:$0xff]  }
 0xb6b   :  { %v1072_v14 = vpack.c.bf16 %v1070_v57, %v1070_v57 }
 0xb6d   :  { %1691 = vmatmul.mubr.msk.bf16.vlgmr.msra.gmra.mrb[40].mxu1 %vm146_vm2, %v1072_v14 }
 0xb6e   :  { %1704 = vmatprep.mubr.msk.bf16.mxu1 %vm1782_vm0, %v1781_v0 }
 0xb9b   :  { %v1115_v58 = vpop.f32.mrb[32].mxu0 }
 0xb9c   :  { %v1686_v59 = vpop.f32.mrb[33].mxu0 }
 0xb9d   :  { %v1118_v60 = vpop.f32.mrb[34].mxu0 }
 0xb9e   :  { %v1687_v61 = vpop.f32.mrb[35].mxu0 }
 0xc40   :  { %v1163_v62 = vpop.f32.mrb[40].mxu1 }
 0xc41   :  { %v1169_v63 = vpack.c.bf16 %v1163_v62, %v1115_v58  ;;  %v1692_v1 = vpop.f32.mrb[41].mxu1 }
 0xc42   :  { %v1166_v2 = vpop.f32.mrb[42].mxu1 }
 0xc43   :  { %v1693_v5 = vpop.f32.mrb[43].mxu1  ;;  %1697 = vmatmul.mubr.msk.bf16.vlgmr.msra.gmra.mrb[36].mxu0 %vm146_vm2, %v1169_v63 }
 0xc44   :  { %1716 = vmatprep.mubr.msk.bf16.mxu0 %vm1782_vm0, %v1781_v0  ;;  %1709 = vmatpush3.bf16.msra.mxu0 %v1737_v33 }
 0xc45   :  { %1710 = vmatprep.subr.bf16.mxu0 %v1781_v0 }
 0xc48   :  { %1711 = vmatpush3.bf16.msra.mxu0 %v1738_v34 }
 0xc49   :  { %1712 = vmatprep.subr.bf16.mxu0 %v1781_v0 }
 0xc4c   :  { %1713 = vmatpush3.bf16.msra.mxu0 %v1739_v11 }
 0xc4d   :  { %1714 = vmatprep.subr.bf16.mxu0 %v1781_v0 }
 0xc50   :  { %1715 = vmatpush3.bf16.msra.mxu0 %v1740_v50 }
 0xd16   :  { %v1210_v6 = vpop.f32.mrb[36].mxu0 }
 0xd17   :  { %v1217_v8 = vadd.f32 %v1210_v6, %v947_v31  ;;  %v1698_v9 = vpop.f32.mrb[37].mxu0  ;;  %v1736_v31 = vld [vmem:[%s2167_s8 + $0x8] sm:$0xff]  }
 0xd18   :  { %v1213_v10 = vpop.f32.mrb[38].mxu0 }
 0xd19   :  { %v1226_v12 = vadd.f32 %v1506_v7, %v1217_v8  ;;  %v1218_v13 = vadd.f32 %v1213_v10, %v2073_v36  ;;  %v1699_v15 = vpop.f32.mrb[39].mxu0 }
 0xd1b   :  { %v1227_v16 = vadd.f32 %v1506_v7, %v1218_v13  ;;  %v1228_v17 = vadd.f32 %v1226_v12, %v1884_v3 }
 0xd1d   :  { %v1230_v18 = vsel %vm80_vm1, %v1228_v17, 0.0  ;;  %v1229_v19 = vadd.f32 %v1227_v16, %v1889_v4  ;;  %v1735_v4 = vld [vmem:[%s2167_s8] sm:$0xff]  }
 0xd1e   :  { %1231 = vadd.xlane.f32.xlu1 %v1230_v18  ;;  %1701 = vmatpush3.bf16.msra.mxu1 %v1735_v4  ;;  %v1520_v4 = vld [vmem:[%s2174_s13] ss:$0 sm:$0xff] }
 0xd1f   :  { %v1233_v20 = vsel %vm80_vm1, %v1229_v19, 0.0  ;;  %1702 = vmatprep.subr.bf16.mxu1 %v1781_v0  ;;  %v1513_v0 = vld [vmem:[%s2172_s11] ss:$0 sm:$0xff] }
 0xd20   :  { %1234 = vadd.xlane.f32.xlu0 %v1233_v20 }
 0xd22   :  { %1703 = vmatpush3.bf16.msra.mxu1 %v1736_v31 }
 0xdab   :  { %v1232_v21 = vpop.xlane.xlu1 %1231 }
 0xdac   :  { %v1237_v22 = vmul.f32 0.03125, %v1232_v21 }
 0xdad   :  { %v1235_v23 = vpop.xlane.xlu0 %1234 }
 0xdae   :  { %v1239_v24 = vsub.f32 %v1228_v17, %v1237_v22  ;;  %v1238_v26 = vmul.f32 0.03125, %v1235_v23 }
 0xdb0   :  { %v1240_v27 = vsub.f32 %v1229_v19, %v1238_v26  ;;  %v1241_v28 = vmul.f32 %v1239_v24, %v1239_v24 }
 0xdb2   :  { %v1243_v29 = vsel %vm80_vm1, %v1241_v28, 0.0  ;;  %v1242_v25 = vmul.f32 %v1240_v27, %v1240_v27 }
 0xdb3   :  { %1244 = vadd.xlane.f32.xlu1 %v1243_v29  ;;  %v1519_v29 = vld [vmem:[%s2173_s12] ss:$0 sm:$0xff] }
 0xdb4   :  { %v1246_v3 = vsel %vm80_vm1, %v1242_v25, 0.0 }
 0xdb5   :  { %1247 = vadd.xlane.f32.xlu0 %v1246_v3 }
 0xe40   :  { %v1245_v36 = vpop.xlane.xlu1 %1244 }
 0xe41   :  { %v1249_v37 = vmul.f32 0.03125, %v1245_v36 }
 0xe42   :  { %v1248_v38 = vpop.xlane.xlu0 %1247 }
 0xe43   :  { %v1251_v39 = vadd.f32 1e-05, %v1249_v37  ;;  %v1250_v40 = vmul.f32 0.03125, %v1248_v38 }
 0xe45   :  { %1773 = vrsqrt.f32 %v1251_v39  ;;  %v1252_v41 = vadd.f32 1e-05, %v1250_v40 }
 0xe47   :  { %1775 = vrsqrt.f32 %v1252_v41 }
 0xe4f   :  { %v1774_v42 = vpop.eup %1773 }
 0xe50   :  { %v1255_v44 = vmul.f32 %v1774_v42, %v1239_v24 }
 0xe51   :  { %v1776_v32 = vpop.eup %1775 }
 0xe52   :  { %v1264_v45 = vmul.f32 %v1507_v43, %v1255_v44  ;;  %v1256_v46 = vmul.f32 %v1776_v32, %v1240_v27 }
 0xe54   :  { %v1265_v47 = vmul.f32 %v1507_v43, %v1256_v46  ;;  %v1273_v48 = vadd.f32 %v1508_v35, %v1264_v45 }
 0xe56   :  { %v1274_v30 = vadd.f32 %v1508_v35, %v1265_v47 }
 0xe58   :  { %v1275_v49 = vpack.c.bf16 %v1274_v30, %v1273_v48 }
 0xe5a   :  { %1705 = vmatmul.mubr.msk.bf16.vlgmr.msra.gmra.mrb[44].mxu1 %vm80_vm1, %v1275_v49 }
 0xf2d   :  { %v1336_v52 = vpop.f32.mrb[44].mxu1 }
 0xf2e   :  { %v1337_v53 = vadd.f32 %v1509_v51, %v1336_v52  ;;  %v1706_v54 = vpop.f32.mrb[45].mxu1 }
 0xf2f   :  { %v1339_v55 = vpop.f32.mrb[46].mxu1 }
 0xf30   :  { %v1340_v56 = vadd.f32 %v1509_v51, %v1339_v55  ;;  %v1707_v57 = vpop.f32.mrb[47].mxu1  ;;  %v1343_v14 = vmax.f32 %v1337_v53, 0.0 }
 0xf32   :  { %v1344_v58 = vmax.f32 %v1340_v56, 0.0 }
 0xf34   :  { %v1345_v59 = vpack.c.bf16 %v1344_v58, %v1343_v14 }
 0xf36   :  { %1717 = vmatmul.mubr.msk.bf16.vlgmr.msra.gmra.mrb[40].mxu0 %vm1385_vm6, %v1345_v59 }
0x1009   :  { %v1423_v60 = vpop.f32.mrb[40].mxu0 }
0x100a   :  { %v1424_v61 = vadd.f32 %v1513_v0, %v1423_v60  ;;  %v1718_v62 = vpop.f32.mrb[41].mxu0 }
0x100b   :  { %v1426_v63 = vpop.f32.mrb[42].mxu0 }
0x100c   :  { %v1427_v1 = vadd.f32 %v1513_v0, %v1426_v63  ;;  %v1719_v2 = vpop.f32.mrb[43].mxu0  ;;  %v1430_v5 = vadd.f32 %v1424_v61, %v1273_v48 }
0x100e   :  { %v1432_v6 = vsel %vm80_vm1, %v1430_v5, 0.0  ;;  %v1431_v7 = vadd.f32 %v1427_v1, %v1274_v30 }
0x100f   :  { %1433 = vadd.xlane.f32.xlu1 %v1432_v6 }
0x1010   :  { %v1435_v8 = vsel %vm80_vm1, %v1431_v7, 0.0 }
0x1011   :  { %1436 = vadd.xlane.f32.xlu0 %v1435_v8 }
0x109c   :  { %v1434_v9 = vpop.xlane.xlu1 %1433 }
0x109d   :  { %v1438_v10 = vmul.f32 0.03125, %v1434_v9 }
0x109e   :  { %v1437_v12 = vpop.xlane.xlu0 %1436 }
0x109f   :  { %v1440_v13 = vsub.f32 %v1430_v5, %v1438_v10  ;;  %v1439_v15 = vmul.f32 0.03125, %v1437_v12 }
0x10a1   :  { %v1441_v16 = vsub.f32 %v1431_v7, %v1439_v15  ;;  %v1442_v17 = vmul.f32 %v1440_v13, %v1440_v13 }
0x10a3   :  { %v1444_v18 = vsel %vm80_vm1, %v1442_v17, 0.0  ;;  %v1443_v19 = vmul.f32 %v1441_v16, %v1441_v16 }
0x10a4   :  { %1445 = vadd.xlane.f32.xlu1 %v1444_v18 }
0x10a5   :  { %v1447_v20 = vsel %vm80_vm1, %v1443_v19, 0.0 }
0x10a6   :  { %1448 = vadd.xlane.f32.xlu0 %v1447_v20 }
0x1131   :  { %v1446_v21 = vpop.xlane.xlu1 %1445 }
0x1132   :  { %v1450_v22 = vmul.f32 0.03125, %v1446_v21 }
0x1133   :  { %v1449_v23 = vpop.xlane.xlu0 %1448 }
0x1134   :  { %v1452_v24 = vadd.f32 1e-05, %v1450_v22  ;;  %v1451_v26 = vmul.f32 0.03125, %v1449_v23 }
0x1136   :  { %1777 = vrsqrt.f32 %v1452_v24  ;;  %v1453_v27 = vadd.f32 1e-05, %v1451_v26 }
0x1138   :  { %1779 = vrsqrt.f32 %v1453_v27 }
0x1140   :  { %v1778_v28 = vpop.eup %1777 }
0x1141   :  { %v1456_v25 = vmul.f32 %v1778_v28, %v1440_v13 }
0x1142   :  { %v1780_v3 = vpop.eup %1779 }
0x1143   :  { %v1465_v31 = vmul.f32 %v1519_v29, %v1456_v25  ;;  %v1457_v33 = vmul.f32 %v1780_v3, %v1441_v16 }
0x1145   :  { %v1474_v34 = vadd.f32 %v1520_v4, %v1465_v31  ;;  %v1466_v36 = vmul.f32 %v1519_v29, %v1457_v33 }
0x1147   :  { %1476 = vst.msk [vmem:[%s2175_s14] sm:$0xff] %vm80_vm1, %v1474_v34  ;;  %v1475_v37 = vadd.f32 %v1520_v4, %v1466_v36 }
0x1149   :  { %1477 = vst.msk [vmem:[%s2175_s14 + $0x8] sm:$0xff] %vm80_vm1, %v1475_v37 }

</bundles_post_ra>
